<compile_context>
chip_gen: v7x
topology: tpu7x:2x2x1
jax: 0.10.0
libtpu: 0.0.40
codegen_flags: <defaults>
</compile_context>

<pallas_src>
import jax
import jax.numpy as jnp
from jax import lax
from jax.experimental import pallas as pl
from jax.experimental.pallas import tpu as pltpu


def _round_up(x, m):
    return ((x + m - 1) // m) * m


# ---------------------------------------------------------------------------
# Forward (reverse=False):  a = ((x - C)**2).sum(channel).argmin(cluster)
# ---------------------------------------------------------------------------
def kmeans_fwd_kernel(x_ref, nct_ref, csq_ref, a_ref):
    # x_ref   : (1, nc, TP)   channel-major pixel tile (lane-dense along TP)
    # nct_ref : (nc, K)       -2 * C^T   (pre-transposed in wrapper)
    # csq_ref : (K, 1)        ||C_k||^2
    # a_ref   : (bs, HW_pad)  VMEM-resident output, written (1, TP) per step
    b = pl.program_id(0)
    j = pl.program_id(1)
    tp = x_ref.shape[2]
    K = csq_ref.shape[0]

    x = x_ref[0]                                              # (nc, TP)
    # MXU: dist[k, p] = -2 * sum_c C[k, c] * x[c, p]  (contract over channels).
    dist = lax.dot_general(
        nct_ref[...], x, (((0,), (0,)), ((), ())),
        preferred_element_type=jnp.float32)                   # (K, TP)
    dist = dist + csq_ref[...]                                # + ||C_k||^2

    # Deterministic first-min argmin over the cluster (sublane) axis; the
    # result is already lane-oriented, so the store below is lane-dense.
    # (If the reduce ever becomes the critical unit, carry a running min over
    #  a K grid axis instead.)
    min_val = jnp.min(dist, axis=0, keepdims=True)            # (1, TP)
    kidx = lax.broadcasted_iota(jnp.int32, dist.shape, 0)     # (K, TP)
    a = jnp.min(jnp.where(dist == min_val, kidx, K),
                axis=0, keepdims=True).astype(jnp.int32)      # (1, TP)

    col = pl.multiple_of(j * tp, 128)
    a_ref[pl.ds(b, 1), pl.ds(col, tp)] = a


def kmeans_forward(x_nchw, C, tp=1024):
    """x_nchw: (bs, nc, H, W) float32;  C: (ncluster, nc) float32
       returns (bs, H*W) int32 nearest-cluster indices."""
    bs, c, h, w = x_nchw.shape
    K, nc = C.shape
    assert c == nc
    HW = h * w
    tp = min(tp, _round_up(HW, 128))          # lane-aligned tile, no oversizing
    hw_pad = _round_up(HW, tp)                # pad instead of asserting N % tp

    x3 = x_nchw.reshape(bs, nc, HW)           # pure reshape of NCHW (no transpose)
    if hw_pad != HW:
        x3 = jnp.pad(x3, ((0, 0), (0, 0), (0, hw_pad - HW)))

    neg2ct = (-2.0 * C).T                     # (nc, K)
    c_sq = jnp.sum(C * C, axis=1, keepdims=True)  # (K, 1)

    a = pl.pallas_call(
        kmeans_fwd_kernel,
        out_shape=jax.ShapeDtypeStruct((bs, hw_pad), jnp.int32),
        grid_spec=pltpu.PrefetchScalarGridSpec(
            num_scalar_prefetch=0,
            grid=(bs, hw_pad // tp),
            in_specs=[
                pl.BlockSpec((1, nc, tp), lambda b, j: (b, 0, j)),  # pixel tile
                pl.BlockSpec((nc, K), lambda b, j: (0, 0)),         # -2*C^T
                pl.BlockSpec((K, 1), lambda b, j: (0, 0)),          # ||C||^2
            ],
            # Full-array, VMEM-resident output: lane-dense writes, one writeback.
            out_specs=pl.BlockSpec((bs, hw_pad), lambda b, j: (0, 0)),
        ),
        compiler_params=pltpu.CompilerParams(
            # Output block is resident across both grid axes -> keep them serial.
            dimension_semantics=("arbitrary", "arbitrary")),
    )(x3, neg2ct, c_sq)
    return a[:, :HW]


# ---------------------------------------------------------------------------
# Reverse (reverse=True):  x = C[idx].permute(0,2,1).reshape(bs, *shape)
# one-hot matmul gather on the MXU, tiled over HW.
# ---------------------------------------------------------------------------
def kmeans_rev_kernel(idx_ref, ct_ref, o_ref):
    # idx_ref : (bs, HW_pad)  resident int32 indices (small)
    # ct_ref  : (nc, K)       pre-transposed codebook (no in-kernel transpose)
    # o_ref   : (1, nc, TH)   lane-dense output tile
    b = pl.program_id(0)
    j = pl.program_id(1)
    th = o_ref.shape[2]
    K = ct_ref.shape[1]

    col = pl.multiple_of(j * th, 128)
    idx = idx_ref[pl.ds(b, 1), pl.ds(col, th)]                # (1, TH)
    ks = lax.broadcasted_iota(jnp.int32, (K, th), 0)          # (K, TH)
    # Keep the one-hot in f32 so gathered codebook values are bit-exact.
    onehot = (ks == idx).astype(ct_ref.dtype)                 # (K, TH)
    o_ref[0] = jnp.dot(ct_ref[...], onehot,
                       preferred_element_type=jnp.float32).astype(o_ref.dtype)


def kmeans_reverse(idx, C, shape=(3, 32, 32), th=512):
    """idx: (bs, HW) int32;  C: (ncluster, nc) float32
       returns (bs, *shape) float32."""
    bs, HW = idx.shape
    K, nc = C.shape
    th = min(th, _round_up(HW, 128))
    hw_pad = _round_up(HW, th)

    idx_p = idx.astype(jnp.int32)
    if hw_pad != HW:
        idx_p = jnp.pad(idx_p, ((0, 0), (0, hw_pad - HW)))
    ct = C.T                                                  # (nc, K)

    out = pl.pallas_call(
        kmeans_rev_kernel,
        out_shape=jax.ShapeDtypeStruct((bs, nc, hw_pad), C.dtype),
        grid_spec=pltpu.PrefetchScalarGridSpec(
            num_scalar_prefetch=0,
            grid=(bs, hw_pad // th),
            in_specs=[
                pl.BlockSpec((bs, hw_pad), lambda b, j: (0, 0)),  # resident idx
                pl.BlockSpec((nc, K), lambda b, j: (0, 0)),       # codebook^T
            ],
            out_specs=pl.BlockSpec((1, nc, th), lambda b, j: (b, 0, j)),
        ),
        compiler_params=pltpu.CompilerParams(
            dimension_semantics=("parallel", "parallel")),
    )(idx_p, ct)
    out = out[:, :, :HW]
    return out.reshape(bs, *shape)


if __name__ == "__main__":
    key = jax.random.PRNGKey(0)
    k_x, k_c = jax.random.split(key)

    bs, nc, h, w = 2, 3, 16, 16
    ncluster = 512

    x = jax.random.normal(k_x, (bs, nc, h, w), dtype=jnp.float32)
    # Deterministic synthetic codebook (the real module fills C via initialize()).
    C = jax.random.normal(k_c, (ncluster, nc), dtype=jnp.float32)

    # ---- forward (reverse=False) ----
    a = jax.block_until_ready(kmeans_forward(x, C))
    assert a.shape == (bs, h * w)

    # pure-JAX reference in the exact (x - c)^2 form
    x_pix = jnp.transpose(x.reshape(bs, nc, h * w), (0, 2, 1))        # (bs, HW, nc)
    dist_ref = ((x_pix[:, :, None, :] - C[None, None, :, :]) ** 2).sum(-1)
    a_ref = jnp.argmin(dist_ref, axis=-1).astype(jnp.int32)

    # The kernel uses the -2*x·C + ||C||^2 formulation (MXU); allow FP near-ties:
    # the chosen cluster's exact distance must equal the reference minimum.
    d_min = jnp.min(dist_ref, axis=-1)
    d_sel = jnp.take_along_axis(dist_ref, a[..., None], axis=-1)[..., 0]
    assert bool(jnp.all(d_sel <= d_min + 1e-4 + 1e-4 * jnp.abs(d_min))), \
        "forward mismatch (distance check)"
    match_frac = jnp.mean((a == a_ref).astype(jnp.float32))
    assert bool(match_frac >= 0.99), "forward mismatch (index check)"

    # ---- forward (reverse=True) ----
    y = jax.block_until_ready(kmeans_reverse(a, C, shape=(nc, h, w)))
    y_ref = jnp.transpose(C[a], (0, 2, 1)).reshape(bs, nc, h, w)
    assert y.shape == (bs, nc, h, w)
    assert bool(jnp.allclose(y, y_ref, atol=1e-6)), "reverse mismatch"

    print("KERNEL_OK")
</pallas_src>

<mosaic_0001>
module attributes {stable_mosaic.version = 11 : i64} {
  func.func @kmeans_fwd_kernel(%arg0: i32, %arg1: i32, %arg2: memref<1x3x256xf32, #tpu.memory_space<vmem>>, %arg3: memref<3x512xf32, #tpu.memory_space<vmem>>, %arg4: memref<512x1xf32, #tpu.memory_space<vmem>>, %arg5: memref<2x256xi32, #tpu.memory_space<vmem>>) attributes {dimension_semantics = [#tpu.dimension_semantics<arbitrary>, #tpu.dimension_semantics<arbitrary>], iteration_bounds = array<i64: 2, 1>, scalar_prefetch = 0 : i64, scratch_operands = 0 : i64, tpu.core_type = #tpu.core_type<tc>, window_params = [{transform_indices = @transform_0, window_bounds = array<i64: 1, 3, 256>}, {pipeline_mode = #tpu.pipeline_mode<synchronous>, transform_indices = @transform_1, window_bounds = array<i64: 3, 512>}, {pipeline_mode = #tpu.pipeline_mode<synchronous>, transform_indices = @transform_2, window_bounds = array<i64: 512, 1>}, {pipeline_mode = #tpu.pipeline_mode<synchronous>, transform_indices = @transform_3, window_bounds = array<i64: 2, 256>}]} {
    %c0 = arith.constant 0 : index
    %c0_0 = arith.constant 0 : index
    %c0_1 = arith.constant 0 : index
    %0 = vector.load %arg2[%c0, %c0_0, %c0_1] : memref<1x3x256xf32, #tpu.memory_space<vmem>>, vector<1x3x256xf32>
    %1 = vector.shape_cast %0 : vector<1x3x256xf32> to vector<3x256xf32>
    %c0_2 = arith.constant 0 : index
    %c0_3 = arith.constant 0 : index
    %2 = vector.load %arg3[%c0_2, %c0_3] : memref<3x512xf32, #tpu.memory_space<vmem>>, vector<3x512xf32>
    %cst = arith.constant dense<0.000000e+00> : vector<512x256xf32>
    %3 = tpu.matmul %2, %1, %cst {dimension_numbers = #tpu.dot_dimension_numbers<[0], [0], [1], [1], [0, 1, 1, 1], [], []>} : vector<3x512xf32>, vector<3x256xf32>, vector<512x256xf32> -> vector<512x256xf32>
    %c0_4 = arith.constant 0 : index
    %c0_5 = arith.constant 0 : index
    %4 = vector.load %arg4[%c0_4, %c0_5] : memref<512x1xf32, #tpu.memory_space<vmem>>, vector<512x1xf32>
    %5 = vector.broadcast %4 : vector<512x1xf32> to vector<512x256xf32>
    %6 = arith.addf %3, %5 : vector<512x256xf32>
    %cst_6 = arith.constant dense<0x7F800000> : vector<256xf32>
    %7 = vector.multi_reduction <minimumf>, %6, %cst_6 [0] : vector<512x256xf32> to vector<256xf32>
    %8 = vector.shape_cast %7 : vector<256xf32> to vector<1x256xf32>
    %9 = tpu.iota {dimensions = array<i32: 0>} : vector<512x256xi32>
    %10 = vector.broadcast %8 : vector<1x256xf32> to vector<512x256xf32>
    %11 = arith.cmpf oeq, %6, %10 : vector<512x256xf32>
    %c512_i32 = arith.constant 512 : i32
    %12 = vector.broadcast %c512_i32 : i32 to vector<512x256xi32>
    %13 = arith.select %11, %9, %12 : vector<512x256xi1>, vector<512x256xi32>
    %cst_7 = arith.constant dense<2147483647> : vector<256xi32>
    %14 = vector.multi_reduction <minsi>, %13, %cst_7 [0] : vector<512x256xi32> to vector<256xi32>
    %15 = vector.shape_cast %14 : vector<256xi32> to vector<1x256xi32>
    %c256_i32 = arith.constant 256 : i32
    %16 = arith.muli %arg1, %c256_i32 : i32
    %17 = tpu.assume_multiple %16, 128 : i32
    %18 = arith.index_cast %arg0 : i32 to index
    %19 = arith.index_cast %17 : i32 to index
    %20 = vector.load %arg5[%18, %19] : memref<2x256xi32, #tpu.memory_space<vmem>>, vector<1x256xi32>
    tpu.vector_store %arg5[%18, %19], %15 {strides = array<i32>} : memref<2x256xi32, #tpu.memory_space<vmem>>, vector<1x256xi32>,
    return
  }
  func.func @transform_0(%arg0: i32, %arg1: i32) -> (i32, i32, i32) {
    %c0_i32 = arith.constant 0 : i32
    %c0_i32_0 = arith.constant 0 : i32
    return %arg0, %c0_i32, %arg1 : i32, i32, i32
  }
  func.func @transform_1(%arg0: i32, %arg1: i32) -> (i32, i32) {
    %c0_i32 = arith.constant 0 : i32
    %c0_i32_0 = arith.constant 0 : i32
    %c0_i32_1 = arith.constant 0 : i32
    return %c0_i32, %c0_i32_0 : i32, i32
  }
  func.func @transform_2(%arg0: i32, %arg1: i32) -> (i32, i32) {
    %c0_i32 = arith.constant 0 : i32
    %c0_i32_0 = arith.constant 0 : i32
    %c0_i32_1 = arith.constant 0 : i32
    return %c0_i32, %c0_i32_0 : i32, i32
  }
  func.func @transform_3(%arg0: i32, %arg1: i32) -> (i32, i32) {
    %c0_i32 = arith.constant 0 : i32
    %c0_i32_0 = arith.constant 0 : i32
    %c0_i32_1 = arith.constant 0 : i32
    return %c0_i32, %c0_i32_0 : i32, i32
  }
}

</mosaic_0001>

<bundles_post_ra>
// kernel: tpu_custom_call.1
= control target key start
LH: loop header
LB: loop body
LE: loop exit
PB: predicated region body
PF: predicated region fallthrough
CT: control target
= control target key end

     0   :  { %8 = vsyncpa [#allocation3], 0  ;;  %s2381_s12 = smov 0   ;;  %s2383_s13 = smov 0   ;;  %s4484_s0 = inlined_call_operand.vmem [shape: f32[2,3,256], index: 0, kind: input, shape index: {}]   ;;  %s4485_s1 = inlined_call_operand.vmem [shape: f32[3,512], index: 1, kind: input, shape index: {}]   ;;  %s4486_s2 = inlined_call_operand.vmem [shape: f32[512,1], index: 2, kind: input, shape index: {}]   ;;  %s4487_s3 = inlined_call_operand.hbm [shape: s32[2,256], index: 3, kind: output, shape index: {}]  }
   0x1   :  { %s2385_s14 = smov 0  }
   0x2 LB: > { %s2182_s15 = sadd.s32 4294967295, %s2355_s14   ;;  %s26_s16 = sadd.s32 1, %s2351_s13  ;;  %s2355_s14 = sphi %s2385_s14, %s14_s14   ;;  %s2351_s13 = sphi %s2383_s13, %s5151_s13   ;;  %s2347_s12 = sphi %s2381_s12, %s5150_s12  }
   0x3   : > { %p28_p0 = scmp.ge.s32.totalorder %s26_s16, 2  ;;  %p2185_p1 = scmp.ge.s32.totalorder %s2355_s14, 1 }
   0x4   : > { %p152_p2 = scmp.lt.s32.totalorder %s2355_s14, 3 }
   0x5   : > { %s5153_s16 = smov (%p28_p0, %s26_s16), 0 }
   0x6   : > { %p153_p3 = pnand %p2185_p1, %p152_p2 }
   0x8   : > { %156 = sbr.rel (%p153_p3) target bundleno = 736 (0x2e0), region = 32 }
   0xf   : > { %v186_v0 = vld [vmem:[%s4485_s1] sm:$0x77]  ;;  %p176_p4 = scmp.lt.s32.totalorder %s2347_s12, 1  ;;  %v2357_v2 = vmov 0.0   ;;  %vm901_vm0 = vcmask 1042432   ;;  %v2358_v7 = vmov 0  }
  0x10   : > { %578 = vxpose.xlu0.b32.start.end [1/1] (short) %v186_v0, 128  ;;  %v574_v1 = vcombine.high %v186_v0, %v186_v0  ;;  %970 = vmatprep.mubr.f32.mxu0 %v2357_v2  ;;  %v187_v5 = vld [vmem:[%s4485_s1 + $0x8] sm:$0x77]  ;;  %vm708_vm1 = vcmask 23552   ;;  %v190_v21 = vld [vmem:[%s4486_s2 + $0x10] sm:$0xff]  ;;  %v191_v24 = vld [vmem:[%s4486_s2 + $0x18] sm:$0xff]  ;;  %s2104_s22 = sshra.s32 %s2347_s12, 1 }
  0x11   : > { %s177_s19 = scalar_select %p176_p4, %s2347_s12, 1  ;;  %1162 = vmatprep.mubr.f32.mxu1 %v2357_v2  ;;  %v575_v6 = vcombine.high %v187_v5, %v187_v5  ;;  %v189_v18 = vld [vmem:[%s4486_s2 + $0x8] sm:$0xff]  ;;  %v188_v25 = vld [vmem:[%s4486_s2] sm:$0xff]  ;;  %v194_v31 = vld [vmem:[%s4486_s2 + $0x30] sm:$0xff] }
  0x12   : > { %610 = vxpose.xlu1.b32.start.end [1/1] (short) %v574_v1, 128  ;;  %v192_v27 = vld [vmem:[%s4486_s2 + $0x20] sm:$0xff]  ;;  %v193_v28 = vld [vmem:[%s4486_s2 + $0x28] sm:$0xff]  ;;  %v195_v32 = vld [vmem:[%s4486_s2 + $0x38] sm:$0xff]  ;;  %s2261_s24 = sshll.u32 %s2104_s22, 2  ;;  %s2360_s26 = smov [#allocation2]  }
  0x13   : > { %s2260_s20 = sshll.u32 %s177_s19, 3  ;;  %v196_v35 = vld [vmem:[%s4486_s2 + $0x40] sm:$0xff]  ;;  %v197_v36 = vld [vmem:[%s4486_s2 + $0x48] sm:$0xff]  ;;  %v198_v38 = vld [vmem:[%s4486_s2 + $0x50] sm:$0xff]  ;;  %s2123_s27 = sshll.u32 %s2360_s26, 4  ;;  %s2124_s27 = int_to_ptr.vmem [resolvable:$true] %s2123_s27 }
  0x14   : > { %s183_s23 = scalar_lea.vmem %s4484_s0, %s2260_s20  ;;  %v199_v39 = vld [vmem:[%s4486_s2 + $0x58] sm:$0xff]  ;;  %v200_v42 = vld [vmem:[%s4486_s2 + $0x60] sm:$0xff]  ;;  %v201_v43 = vld [vmem:[%s4486_s2 + $0x68] sm:$0xff]  ;;  %p4449_p5 = scmp.eq.s32.totalorder %s2182_s15, 1 }
  0x15   : > { %v185_v3 = vld [vmem:[%s183_s23] sm:$0x77]  ;;  %v202_v46 = vld [vmem:[%s4486_s2 + $0x70] sm:$0xff]  ;;  %v203_v47 = vld [vmem:[%s4486_s2 + $0x78] sm:$0xff]  ;;  %s2109_s23 = sand.u32 1, %s2347_s12  ;;  %s2303_s29 = scalar_lea.vmem %s2124_s27, 64 }
  0x16   : > { %v707_v4 = vcombine.high %v185_v3, %v185_v3  ;;  %v204_v49 = vld [vmem:[%s4486_s2 + $0x80] sm:$0xff]  ;;  %v205_v50 = vld [vmem:[%s4486_s2 + $0x88] sm:$0xff]  ;;  %v206_v53 = vld [vmem:[%s4486_s2 + $0x90] sm:$0xff]  ;;  %s2113_s25 = sadd.s32 %s2261_s24, %s2109_s23  ;;  %p2304_p6 = scmp.ne.s32.totalorder %s2124_s27, %s2303_s29 }
  0x17   : > { %v207_v54 = vld [vmem:[%s4486_s2 + $0x98] sm:$0xff]  ;;  %v208_v57 = vld [vmem:[%s4486_s2 + $0xa0] sm:$0xff]  ;;  %v209_v58 = vld [vmem:[%s4486_s2 + $0xa8] sm:$0xff]  ;;  %s2114_s12 = scalar_lea.vmem [#allocation2], %s2113_s25  ;;  %p2310_p9 = scmp.lt.s32.totalorder %s2124_s27, %s2124_s27 }
  0x18   : > { %2188 = vmatprep.subr.msk.mxu0 %vm901_vm0, %v707_v4  ;;  %2262 = vmatprep.subr.msk.mxu1 %vm901_vm0, %v707_v4  ;;  %v210_v60 = vld [vmem:[%s4486_s2 + $0xb0] sm:$0xff]  ;;  %v211_v62 = vld [vmem:[%s4486_s2 + $0xb8] sm:$0xff]  ;;  %v212_v0 = vld [vmem:[%s4486_s2 + $0xc0] sm:$0xff]  ;;  %p2305_p7 = pnand %p2304_p6, %p4449_p5  ;;  %p2311_p10 = scmp.lt.s32.totalorder %s2303_s29, %s2303_s29 }
  0x19   : > { %2189 = vmatpush1.msk.msra.mxu0 %vm901_vm0, %v185_v3  ;;  %2263 = vmatpush1.msk.msra.mxu1 %vm901_vm0, %v185_v3  ;;  %v213_v1 = vld [vmem:[%s4486_s2 + $0xc8] sm:$0xff] }
  0x1a   : > { %p2306_p8 = pneg %p2305_p7  ;;  %p2312_p11 = por %p2311_p10, %p2310_p9 }
  0x1c   : > { %p2313_p12 = pnand %p2312_p11, %p2306_p8 }
  0x4d   : > { %642 = vxpose.xlu0.b32.start.end [1/1] (short) %v187_v5, 128  ;;  %v214_v5 = vld [vmem:[%s4486_s2 + $0xd0] sm:$0xff] }
  0x4f   : > { %674 = vxpose.xlu1.b32.start.end [1/1] (short) %v575_v6, 128  ;;  %v215_v6 = vld [vmem:[%s4486_s2 + $0xd8] sm:$0xff] }
  0x6d   : > { %2299 = vset.pattern.permute.xlu1 %v2358_v7 }
  0x76   : > { %2298 = vset.pattern.permute.xlu0 %v2358_v7 }
  0x90   : > { %v594_v8 = vpop.trf.xlu0 }
  0x91   : > { %2190 = vmatmul.mubr.msk.f32.vlgmr.msra.gmra.mrb[0].mxu0 %vm708_vm1, %v594_v8  ;;  %v216_v8 = vld [vmem:[%s4486_s2 + $0xe0] sm:$0xff] }
  0x92   : > { %976 = vmatprep.mubr.f32.mxu0 %v2357_v2  ;;  %v2417_v9 = vpop.trf.xlu1 }
  0x94   : > { %v595_v10 = vpop.trf.xlu0 }
  0x95   : > { %2191 = vmatmul.mubr.msk.f32.gmra.mrb[2].mxu0 %vm708_vm1, %v595_v10  ;;  %v217_v10 = vld [vmem:[%s4486_s2 + $0xe8] sm:$0xff] }
  0x96   : > { %982 = vmatprep.mubr.f32.mxu0 %v2357_v2  ;;  %v2421_v11 = vpop.trf.xlu1 }
  0x98   : > { %v596_v12 = vpop.trf.xlu0 }
  0x99   : > { %2192 = vmatmul.mubr.msk.f32.gmra.mrb[4].mxu0 %vm708_vm1, %v596_v12  ;;  %v218_v12 = vld [vmem:[%s4486_s2 + $0xf0] sm:$0xff] }
  0x9a   : > { %988 = vmatprep.mubr.f32.mxu0 %v2357_v2  ;;  %v2425_v13 = vpop.trf.xlu1 }
  0x9c   : > { %v597_v14 = vpop.trf.xlu0 }
  0x9d   : > { %2193 = vmatmul.mubr.msk.f32.gmra.mrb[6].mxu0 %vm708_vm1, %v597_v14 }
  0x9e   : > { %994 = vmatprep.mubr.f32.mxu0 %v2357_v2  ;;  %v2430_v16 = vpop.trf.xlu1 }
  0xa0   : > { %v598_v15 = vpop.trf.xlu0 }
  0xa1   : > { %2194 = vmatmul.mubr.msk.f32.gmra.mrb[8].mxu0 %vm708_vm1, %v598_v15 }
  0xa2   : > { %1000 = vmatprep.mubr.f32.mxu0 %v2357_v2  ;;  %v2438_v19 = vpop.trf.xlu1 }
  0xa4   : > { %v599_v17 = vpop.trf.xlu0 }
  0xa5   : > { %2195 = vmatmul.mubr.msk.f32.gmra.mrb[10].mxu0 %vm708_vm1, %v599_v17  ;;  %v221_v17 = vld [vmem:[%s4486_s2 + $0x108] sm:$0xff] }
  0xa6   : > { %1006 = vmatprep.mubr.f32.mxu0 %v2357_v2  ;;  %v2446_v23 = vpop.trf.xlu1 }
  0xa8   : > { %v600_v20 = vpop.trf.xlu0 }
  0xa9   : > { %259 = vperm.xlu1 %2299, %v189_v18   ;;  %2196 = vmatmul.mubr.msk.f32.gmra.mrb[12].mxu0 %vm708_vm1, %v600_v20 }
  0xaa   : > { %1012 = vmatprep.mubr.f32.mxu0 %v2357_v2  ;;  %v2463_v29 = vpop.trf.xlu1 }
  0xac   : > { %v601_v22 = vpop.trf.xlu0 }
  0xad   : > { %264 = vperm.xlu1 %2299, %v190_v21   ;;  %2197 = vmatmul.mubr.msk.f32.gmra.mrb[14].mxu0 %vm708_vm1, %v601_v22  ;;  %v223_v21 = vld [vmem:[%s4486_s2 + $0x118] sm:$0xff] }
  0xae   : > { %1018 = vmatprep.mubr.f32.mxu0 %v2357_v2  ;;  %v2474_v34 = vpop.trf.xlu1 }
  0xb0   : > { %v602_v26 = vpop.trf.xlu0 }
  0xb1   : > { %269 = vperm.xlu1 %2299, %v191_v24   ;;  %2198 = vmatmul.mubr.msk.f32.gmra.mrb[16].mxu0 %vm708_vm1, %v602_v26  ;;  %v225_v24 = vld [vmem:[%s4486_s2 + $0x128] sm:$0xff] }
  0xb2   : > { %254 = vperm.xlu0 %2298, %v188_v25   ;;  %1024 = vmatprep.mubr.f32.mxu0 %v2357_v2  ;;  %v2491_v40 = vpop.trf.xlu1 }
  0xb4   : > { %v603_v30 = vpop.trf.xlu0 }
  0xb5   : > { %274 = vperm.xlu1 %2299, %v192_v27   ;;  %2199 = vmatmul.mubr.msk.f32.gmra.mrb[18].mxu0 %vm708_vm1, %v603_v30  ;;  %v226_v27 = vld [vmem:[%s4486_s2 + $0x130] sm:$0xff]  ;;  %v228_v30 = vld [vmem:[%s4486_s2 + $0x140] sm:$0xff] }
  0xb6   : > { %279 = vperm.xlu0 %2298, %v193_v28   ;;  %1030 = vmatprep.mubr.f32.mxu0 %v2357_v2  ;;  %v2502_v45 = vpop.trf.xlu1  ;;  %v227_v28 = vld [vmem:[%s4486_s2 + $0x138] sm:$0xff] }
  0xb8   : > { %v604_v33 = vpop.trf.xlu0 }
  0xb9   : > { %284 = vperm.xlu1 %2299, %v194_v31   ;;  %2200 = vmatmul.mubr.msk.f32.gmra.mrb[20].mxu0 %vm708_vm1, %v604_v33 }
  0xba   : > { %289 = vperm.xlu0 %2298, %v195_v32   ;;  %1036 = vmatprep.mubr.f32.mxu0 %v2357_v2  ;;  %v2519_v51 = vpop.trf.xlu1  ;;  %v229_v32 = vld [vmem:[%s4486_s2 + $0x148] sm:$0xff] }
  0xbc   : > { %v605_v37 = vpop.trf.xlu0 }
  0xbd   : > { %294 = vperm.xlu1 %2299, %v196_v35   ;;  %2201 = vmatmul.mubr.msk.f32.gmra.mrb[22].mxu0 %vm708_vm1, %v605_v37  ;;  %v231_v35 = vld [vmem:[%s4486_s2 + $0x158] sm:$0xff] }
  0xbe   : > { %299 = vperm.xlu0 %2298, %v197_v36   ;;  %1042 = vmatprep.mubr.f32.mxu0 %v2357_v2  ;;  %v2531_v56 = vpop.trf.xlu1 }
  0xc0   : > { %v606_v41 = vpop.trf.xlu0 }
  0xc1   : > { %304 = vperm.xlu1 %2299, %v198_v38   ;;  %2202 = vmatmul.mubr.msk.f32.gmra.mrb[24].mxu0 %vm708_vm1, %v606_v41  ;;  %v232_v38 = vld [vmem:[%s4486_s2 + $0x160] sm:$0xff]  ;;  %v234_v41 = vld [vmem:[%s4486_s2 + $0x170] sm:$0xff] }
  0xc2   : > { %309 = vperm.xlu0 %2298, %v199_v39   ;;  %1048 = vmatprep.mubr.f32.mxu0 %v2357_v2  ;;  %v2548_v61 = vpop.trf.xlu1  ;;  %v233_v39 = vld [vmem:[%s4486_s2 + $0x168] sm:$0xff] }
  0xc4   : > { %v607_v44 = vpop.trf.xlu0 }
  0xc5   : > { %314 = vperm.xlu1 %2299, %v200_v42   ;;  %2203 = vmatmul.mubr.msk.f32.gmra.mrb[26].mxu0 %vm708_vm1, %v607_v44 }
  0xc6   : > { %319 = vperm.xlu0 %2298, %v201_v43   ;;  %1054 = vmatprep.mubr.f32.mxu0 %v2357_v2  ;;  %v2566_v4 = vpop.trf.xlu1  ;;  %v235_v43 = vld [vmem:[%s4486_s2 + $0x178] sm:$0xff] }
  0xc8   : > { %v608_v48 = vpop.trf.xlu0 }
  0xc9   : > { %324 = vperm.xlu1 %2299, %v202_v46   ;;  %2204 = vmatmul.mubr.msk.f32.gmra.mrb[28].mxu0 %vm708_vm1, %v608_v48  ;;  %v237_v46 = vld [vmem:[%s4486_s2 + $0x188] sm:$0xff] }
  0xca   : > { %329 = vperm.xlu0 %2298, %v203_v47   ;;  %1060 = vmatprep.mubr.f32.mxu0 %v2357_v2 }
  0xcc   : > { %v609_v52 = vpop.trf.xlu0 }
  0xcd   : > { %334 = vperm.xlu1 %2299, %v204_v49   ;;  %2205 = vmatmul.mubr.msk.f32.gmra.mrb[30].mxu0 %vm708_vm1, %v609_v52  ;;  %v238_v49 = vld [vmem:[%s4486_s2 + $0x190] sm:$0xff] }
  0xce   : > { %339 = vperm.xlu0 %2298, %v205_v50   ;;  %1066 = vmatprep.mubr.f32.mxu0 %v2357_v2  ;;  %v239_v50 = vld [vmem:[%s4486_s2 + $0x198] sm:$0xff] }
  0xd0   : > { %v658_v55 = vpop.trf.xlu0 }
  0xd1   : > { %344 = vperm.xlu1 %2299, %v206_v53   ;;  %2206 = vmatmul.mubr.msk.f32.gmra.mrb[32].mxu0 %vm708_vm1, %v2417_v9  ;;  %v2585_v9 = vpop.trf.xlu1  ;;  %v241_v53 = vld [vmem:[%s4486_s2 + $0x1a8] sm:$0xff] }
  0xd2   : > { %2222 = vmatmul.mubr.msk.f32.vlgmr.msra.gmra.mrb[0].mxu1 %vm708_vm1, %v658_v55  ;;  %349 = vperm.xlu0 %2298, %v207_v54   ;;  %v242_v54 = vld [vmem:[%s4486_s2 + $0x1b0] sm:$0xff]  ;;  %v243_v55 = vld [vmem:[%s4486_s2 + $0x1b8] sm:$0xff] }
  0xd3   : > { %1072 = vmatprep.mubr.f32.mxu0 %v2357_v2  ;;  %1168 = vmatprep.mubr.f32.mxu1 %v2357_v2 }
  0xd4   : > { %v659_v59 = vpop.trf.xlu0 }
  0xd5   : > { %354 = vperm.xlu1 %2299, %v208_v57   ;;  %2207 = vmatmul.mubr.msk.f32.gmra.mrb[34].mxu0 %vm708_vm1, %v2421_v11  ;;  %v2603_v15 = vpop.trf.xlu1  ;;  %v244_v57 = vld [vmem:[%s4486_s2 + $0x1c0] sm:$0xff] }
  0xd6   : > { %2223 = vmatmul.mubr.msk.f32.gmra.mrb[2].mxu1 %vm708_vm1, %v659_v59  ;;  %359 = vperm.xlu0 %2298, %v209_v58   ;;  %v245_v58 = vld [vmem:[%s4486_s2 + $0x1c8] sm:$0xff]  ;;  %v246_v59 = vld [vmem:[%s4486_s2 + $0x1d0] sm:$0xff] }
  0xd7   : > { %1078 = vmatprep.mubr.f32.mxu0 %v2357_v2  ;;  %1174 = vmatprep.mubr.f32.mxu1 %v2357_v2 }
  0xd8   : > { %v660_v63 = vpop.trf.xlu0 }
  0xd9   : > { %364 = vperm.xlu1 %2299, %v210_v60   ;;  %2208 = vmatmul.mubr.msk.f32.gmra.mrb[36].mxu0 %vm708_vm1, %v2425_v13  ;;  %v219_v13 = vld [vmem:[%s4486_s2 + $0xf8] sm:$0xff]  ;;  %v2622_v20 = vpop.trf.xlu1 }
  0xda   : > { %2224 = vmatmul.mubr.msk.f32.gmra.mrb[4].mxu1 %vm708_vm1, %v660_v63  ;;  %369 = vperm.xlu0 %2298, %v211_v62   ;;  %v248_v62 = vld [vmem:[%s4486_s2 + $0x1e0] sm:$0xff]  ;;  %v249_v63 = vld [vmem:[%s4486_s2 + $0x1e8] sm:$0xff] }
  0xdb   : > { %1084 = vmatprep.mubr.f32.mxu0 %v2357_v2  ;;  %1180 = vmatprep.mubr.f32.mxu1 %v2357_v2 }
  0xdc   : > { %v661_v3 = vpop.trf.xlu0 }
  0xdd   : > { %374 = vperm.xlu1 %2299, %v212_v0   ;;  %2209 = vmatmul.mubr.msk.f32.gmra.mrb[38].mxu0 %vm708_vm1, %v2430_v16  ;;  %v220_v16 = vld [vmem:[%s4486_s2 + $0x100] sm:$0xff]  ;;  %v2640_v26 = vpop.trf.xlu1 }
  0xde   : > { %2225 = vmatmul.mubr.msk.f32.gmra.mrb[6].mxu1 %vm708_vm1, %v661_v3  ;;  %379 = vperm.xlu0 %2298, %v213_v1   ;;  %v250_v1 = vld [vmem:[%s4486_s2 + $0x1f0] sm:$0xff]  ;;  %v251_v3 = vld [vmem:[%s4486_s2 + $0x1f8] sm:$0xff] }
  0xdf   : > { %1090 = vmatprep.mubr.f32.mxu0 %v2357_v2  ;;  %1186 = vmatprep.mubr.f32.mxu1 %v2357_v2 }
  0xe0   : > { %v662_v7 = vpop.trf.xlu0 }
  0xe1   : > { %384 = vperm.xlu1 %2299, %v214_v5   ;;  %2210 = vmatmul.mubr.msk.f32.gmra.mrb[40].mxu0 %vm708_vm1, %v2438_v19  ;;  %v222_v19 = vld [vmem:[%s4486_s2 + $0x110] sm:$0xff]  ;;  %v2659_v31 = vpop.trf.xlu1 }
  0xe2   : > { %2226 = vmatmul.mubr.msk.f32.gmra.mrb[8].mxu1 %vm708_vm1, %v662_v7  ;;  %389 = vperm.xlu0 %2298, %v215_v6  }
  0xe3   : > { %1096 = vmatprep.mubr.f32.mxu0 %v2357_v2  ;;  %1192 = vmatprep.mubr.f32.mxu1 %v2357_v2 }
  0xe4   : > { %v663_v11 = vpop.trf.xlu0 }
  0xe5   : > { %394 = vperm.xlu1 %2299, %v216_v8   ;;  %2211 = vmatmul.mubr.msk.f32.gmra.mrb[42].mxu0 %vm708_vm1, %v2446_v23  ;;  %v224_v23 = vld [vmem:[%s4486_s2 + $0x120] sm:$0xff]  ;;  %v693_v37 = vpop.trf.xlu1 }
  0xe6   : > { %2227 = vmatmul.mubr.msk.f32.gmra.mrb[10].mxu1 %vm708_vm1, %v663_v11  ;;  %399 = vperm.xlu0 %2298, %v217_v10  }
  0xe7   : > { %1102 = vmatprep.mubr.f32.mxu0 %v2357_v2  ;;  %1198 = vmatprep.mubr.f32.mxu1 %v2357_v2 }
  0xe8   : > { %v664_v14 = vpop.trf.xlu0 }
  0xe9   : > { %404 = vperm.xlu1 %2299, %v218_v12   ;;  %2212 = vmatmul.mubr.msk.f32.gmra.mrb[44].mxu0 %vm708_vm1, %v2463_v29  ;;  %v694_v42 = vpop.trf.xlu1 }
  0xea   : > { %2228 = vmatmul.mubr.msk.f32.gmra.mrb[12].mxu1 %vm708_vm1, %v664_v14  ;;  %409 = vperm.xlu0 %2298, %v219_v13  }
  0xeb   : > { %1108 = vmatprep.mubr.f32.mxu0 %v2357_v2  ;;  %1204 = vmatprep.mubr.f32.mxu1 %v2357_v2 }
  0xec   : > { %v665_v18 = vpop.trf.xlu0 }
  0xed   : > { %414 = vperm.xlu1 %2299, %v220_v16   ;;  %2213 = vmatmul.mubr.msk.f32.gmra.mrb[46].mxu0 %vm708_vm1, %v2474_v34  ;;  %v230_v34 = vld [vmem:[%s4486_s2 + $0x150] sm:$0xff]  ;;  %v695_v48 = vpop.trf.xlu1 }
  0xee   : > { %2229 = vmatmul.mubr.msk.f32.gmra.mrb[14].mxu1 %vm708_vm1, %v665_v18  ;;  %419 = vperm.xlu0 %2298, %v221_v17  }
  0xef   : > { %1114 = vmatprep.mubr.f32.mxu0 %v2357_v2  ;;  %1210 = vmatprep.mubr.f32.mxu1 %v2357_v2 }
  0xf0   : > { %v666_v22 = vpop.trf.xlu0 }
  0xf1   : > { %424 = vperm.xlu1 %2299, %v222_v19   ;;  %2214 = vmatmul.mubr.msk.f32.gmra.mrb[48].mxu0 %vm708_vm1, %v2491_v40  ;;  %v696_v52 = vpop.trf.xlu1 }
  0xf2   : > { %2230 = vmatmul.mubr.msk.f32.gmra.mrb[16].mxu1 %vm708_vm1, %v666_v22  ;;  %429 = vperm.xlu0 %2298, %v223_v21  }
  0xf3   : > { %1120 = vmatprep.mubr.f32.mxu0 %v2357_v2  ;;  %1216 = vmatprep.mubr.f32.mxu1 %v2357_v2 }
  0xf4   : > { %v667_v25 = vpop.trf.xlu0 }
  0xf5   : > { %434 = vperm.xlu1 %2299, %v224_v23   ;;  %2215 = vmatmul.mubr.msk.f32.gmra.mrb[50].mxu0 %vm708_vm1, %v2502_v45  ;;  %v236_v45 = vld [vmem:[%s4486_s2 + $0x180] sm:$0xff] }
  0xf6   : > { %2231 = vmatmul.mubr.msk.f32.gmra.mrb[18].mxu1 %vm708_vm1, %v667_v25  ;;  %439 = vperm.xlu0 %2298, %v225_v24  }
  0xf7   : > { %1126 = vmatprep.mubr.f32.mxu0 %v2357_v2  ;;  %1222 = vmatprep.mubr.f32.mxu1 %v2357_v2 }
  0xf8   : > { %v668_v29 = vpop.trf.xlu0 }
  0xf9   : > { %444 = vperm.xlu1 %2299, %v226_v27   ;;  %2216 = vmatmul.mubr.msk.f32.gmra.mrb[52].mxu0 %vm708_vm1, %v2519_v51  ;;  %v240_v51 = vld [vmem:[%s4486_s2 + $0x1a0] sm:$0xff] }
  0xfa   : > { %2232 = vmatmul.mubr.msk.f32.gmra.mrb[20].mxu1 %vm708_vm1, %v668_v29  ;;  %449 = vperm.xlu0 %2298, %v227_v28  }
  0xfb   : > { %1132 = vmatprep.mubr.f32.mxu0 %v2357_v2  ;;  %1228 = vmatprep.mubr.f32.mxu1 %v2357_v2 }
  0xfc   : > { %v669_v33 = vpop.trf.xlu0 }
  0xfd   : > { %454 = vperm.xlu1 %2299, %v228_v30   ;;  %2217 = vmatmul.mubr.msk.f32.gmra.mrb[54].mxu0 %vm708_vm1, %v2531_v56  ;;  %v697_v56 = vpop.trf.xlu1 }
  0xfe   : > { %2233 = vmatmul.mubr.msk.f32.gmra.mrb[22].mxu1 %vm708_vm1, %v669_v33  ;;  %459 = vperm.xlu0 %2298, %v229_v32  }
  0xff   : > { %1138 = vmatprep.mubr.f32.mxu0 %v2357_v2  ;;  %1234 = vmatprep.mubr.f32.mxu1 %v2357_v2 }
 0x100   : > { %v670_v36 = vpop.trf.xlu0 }
 0x101   : > { %464 = vperm.xlu1 %2299, %v230_v34   ;;  %2218 = vmatmul.mubr.msk.f32.gmra.mrb[56].mxu0 %vm708_vm1, %v2548_v61  ;;  %v698_v60 = vpop.trf.xlu1  ;;  %v247_v61 = vld [vmem:[%s4486_s2 + $0x1d8] sm:$0xff] }
 0x102   : > { %2234 = vmatmul.mubr.msk.f32.gmra.mrb[24].mxu1 %vm708_vm1, %v670_v36  ;;  %469 = vperm.xlu0 %2298, %v231_v35  }
 0x103   : > { %1144 = vmatprep.mubr.f32.mxu0 %v2357_v2  ;;  %1240 = vmatprep.mubr.f32.mxu1 %v2357_v2 }
 0x104   : > { %v671_v40 = vpop.trf.xlu0 }
 0x105   : > { %474 = vperm.xlu1 %2299, %v232_v38   ;;  %2219 = vmatmul.mubr.msk.f32.gmra.mrb[58].mxu0 %vm708_vm1, %v2566_v4  ;;  %v699_v0 = vpop.trf.xlu1 }
 0x106   : > { %2235 = vmatmul.mubr.msk.f32.gmra.mrb[26].mxu1 %vm708_vm1, %v671_v40  ;;  %479 = vperm.xlu0 %2298, %v233_v39  }
 0x107   : > { %1150 = vmatprep.mubr.f32.mxu0 %v2357_v2  ;;  %1246 = vmatprep.mubr.f32.mxu1 %v2357_v2 }
 0x108   : > { %v672_v44 = vpop.trf.xlu0 }
 0x109   : > { %484 = vperm.xlu1 %2299, %v234_v41   ;;  %2220 = vmatmul.mubr.msk.f32.gmra.mrb[60].mxu0 %vm708_vm1, %v2585_v9  ;;  %v700_v4 = vpop.trf.xlu1 }
 0x10a   : > { %2236 = vmatmul.mubr.msk.f32.gmra.mrb[28].mxu1 %vm708_vm1, %v672_v44  ;;  %489 = vperm.xlu0 %2298, %v235_v43  }
 0x10b   : > { %1156 = vmatprep.mubr.f32.mxu0 %v2357_v2  ;;  %1252 = vmatprep.mubr.f32.mxu1 %v2357_v2 }
 0x10c   : > { %v673_v47 = vpop.trf.xlu0 }
 0x10d   : > { %494 = vperm.xlu1 %2299, %v236_v45   ;;  %2221 = vmatmul.mubr.msk.f32.gmra.mrb[62].mxu0 %vm708_vm1, %v2603_v15  ;;  %v701_v5 = vpop.trf.xlu1 }
 0x10e   : > { %2237 = vmatmul.mubr.msk.f32.gmra.mrb[30].mxu1 %vm708_vm1, %v673_v47  ;;  %499 = vperm.xlu0 %2298, %v237_v46  }
 0x10f   : > { %1258 = vmatprep.mubr.f32.mxu1 %v2357_v2 }
 0x111   : > { %504 = vperm.xlu1 %2299, %v238_v49   ;;  %v702_v6 = vpop.trf.xlu1 }
 0x112   : > { %2238 = vmatmul.mubr.msk.f32.gmra.mrb[32].mxu1 %vm708_vm1, %v2622_v20  ;;  %509 = vperm.xlu0 %2298, %v239_v50  }
 0x113   : > { %1264 = vmatprep.mubr.f32.mxu1 %v2357_v2 }
 0x115   : > { %514 = vperm.xlu1 %2299, %v240_v51   ;;  %v703_v7 = vpop.trf.xlu1 }
 0x116   : > { %2239 = vmatmul.mubr.msk.f32.gmra.mrb[34].mxu1 %vm708_vm1, %v2640_v26  ;;  %519 = vperm.xlu0 %2298, %v241_v53  }
 0x117   : > { %1270 = vmatprep.mubr.f32.mxu1 %v2357_v2 }
 0x119   : > { %524 = vperm.xlu1 %2299, %v242_v54   ;;  %v704_v8 = vpop.trf.xlu1 }
 0x11a   : > { %2240 = vmatmul.mubr.msk.f32.gmra.mrb[36].mxu1 %vm708_vm1, %v2659_v31  ;;  %529 = vperm.xlu0 %2298, %v243_v55  }
 0x11b   : > { %1276 = vmatprep.mubr.f32.mxu1 %v2357_v2 }
 0x11d   : > { %534 = vperm.xlu1 %2299, %v244_v57   ;;  %v705_v9 = vpop.trf.xlu1 }
 0x11e   : > { %2241 = vmatmul.mubr.msk.f32.gmra.mrb[38].mxu1 %vm708_vm1, %v693_v37  ;;  %539 = vperm.xlu0 %2298, %v245_v58  }
 0x11f   : > { %1282 = vmatprep.mubr.f32.mxu1 %v2357_v2 }
 0x121   : > { %544 = vperm.xlu1 %2299, %v246_v59  }
 0x122   : > { %2242 = vmatmul.mubr.msk.f32.gmra.mrb[40].mxu1 %vm708_vm1, %v694_v42  ;;  %549 = vperm.xlu0 %2298, %v247_v61  }
 0x123   : > { %1288 = vmatprep.mubr.f32.mxu1 %v2357_v2 }
 0x125   : > { %554 = vperm.xlu1 %2299, %v248_v62  }
 0x126   : > { %2243 = vmatmul.mubr.msk.f32.gmra.mrb[42].mxu1 %vm708_vm1, %v695_v48  ;;  %559 = vperm.xlu0 %2298, %v249_v63  }
 0x127   : > { %1294 = vmatprep.mubr.f32.mxu1 %v2357_v2 }
 0x128   : > { %v260_v10 = vpop.permute.xlu1 %259 }
 0x129   : > { %564 = vperm.xlu1 %2299, %v250_v1  }
 0x12a   : > { %2244 = vmatmul.mubr.msk.f32.gmra.mrb[44].mxu1 %vm708_vm1, %v696_v52  ;;  %569 = vperm.xlu0 %2298, %v251_v3  }
 0x12b   : > { %1300 = vmatprep.mubr.f32.mxu1 %v2357_v2 }
 0x12c   : > { %v2790_v11 = vpop.permute.xlu1 %264 }
 0x12d   : > { %4710 = vst [vmem:[#allocation5_spill] sm:$0xff] %v2790_v11 }
 0x12e   : > { %2245 = vmatmul.mubr.msk.f32.gmra.mrb[46].mxu1 %vm708_vm1, %v697_v56 }
 0x12f   : > { %1306 = vmatprep.mubr.f32.mxu1 %v2357_v2 }
 0x130   : > { %v2792_v12 = vpop.permute.xlu1 %269 }
 0x131   : > { %v2794_v13 = vpop.permute.xlu0 %254 }
 0x132   : > { %2246 = vmatmul.mubr.msk.f32.gmra.mrb[48].mxu1 %vm708_vm1, %v698_v60  ;;  %4711 = vst [vmem:[#allocation6_spill] sm:$0xff] %v2794_v13 }
 0x133   : > { %1312 = vmatprep.mubr.f32.mxu1 %v2357_v2 }
 0x134   : > { %v2796_v14 = vpop.permute.xlu1 %274 }
 0x135   : > { %v2798_v15 = vpop.permute.xlu0 %279 }
 0x136   : > { %2247 = vmatmul.mubr.msk.f32.gmra.mrb[50].mxu1 %vm708_vm1, %v699_v0 }
 0x137   : > { %1318 = vmatprep.mubr.f32.mxu1 %v2357_v2 }
 0x138   : > { %v2804_v18 = vpop.permute.xlu1 %284 }
 0x139   : > { %4713 = vst [vmem:[#allocation8_spill] sm:$0xff] %v2804_v18  ;;  %v2806_v19 = vpop.permute.xlu0 %289 }
 0x13a   : > { %2248 = vmatmul.mubr.msk.f32.gmra.mrb[52].mxu1 %vm708_vm1, %v700_v4 }
 0x13b   : > { %1324 = vmatprep.mubr.f32.mxu1 %v2357_v2 }
 0x13c   : > { %v2814_v24 = vpop.permute.xlu1 %294 }
 0x13d   : > { %v2818_v26 = vpop.permute.xlu0 %299 }
 0x13e   : > { %2249 = vmatmul.mubr.msk.f32.gmra.mrb[54].mxu1 %vm708_vm1, %v701_v5 }
 0x13f   : > { %1330 = vmatprep.mubr.f32.mxu1 %v2357_v2 }
 0x140   : > { %v2824_v29 = vpop.permute.xlu1 %304 }
 0x141   : > { %v2828_v31 = vpop.permute.xlu0 %309 }
 0x142   : > { %2250 = vmatmul.mubr.msk.f32.gmra.mrb[56].mxu1 %vm708_vm1, %v702_v6 }
 0x143   : > { %1336 = vmatprep.mubr.f32.mxu1 %v2357_v2 }
 0x144   : > { %v2834_v34 = vpop.permute.xlu1 %314 }
 0x145   : > { %v2838_v36 = vpop.permute.xlu0 %319 }
 0x146   : > { %2251 = vmatmul.mubr.msk.f32.gmra.mrb[58].mxu1 %vm708_vm1, %v703_v7 }
 0x147   : > { %1342 = vmatprep.mubr.f32.mxu1 %v2357_v2 }
 0x148   : > { %v2844_v39 = vpop.permute.xlu1 %324 }
 0x149   : > { %v2848_v41 = vpop.permute.xlu0 %329 }
 0x14a   : > { %2252 = vmatmul.mubr.msk.f32.gmra.mrb[60].mxu1 %vm708_vm1, %v704_v8 }
 0x14b   : > { %1348 = vmatprep.mubr.f32.mxu1 %v2357_v2 }
 0x14c   : > { %v2854_v44 = vpop.permute.xlu1 %334 }
 0x14d   : > { %v2858_v46 = vpop.permute.xlu0 %339 }
 0x14e   : > { %2253 = vmatmul.mubr.msk.f32.gmra.mrb[62].mxu1 %vm708_vm1, %v705_v9 }
 0x150   : > { %v2864_v49 = vpop.permute.xlu1 %344 }
 0x151   : > { %v2868_v51 = vpop.permute.xlu0 %349 }
 0x154   : > { %v2874_v54 = vpop.permute.xlu1 %354 }
 0x155   : > { %v2878_v56 = vpop.permute.xlu0 %359 }
 0x156   : > { %4726 = vst [vmem:[#allocation21_spill] sm:$0xff] %v2878_v56 }
 0x158   : > { %v2884_v59 = vpop.permute.xlu1 %364 }
 0x159   : > { %v2888_v61 = vpop.permute.xlu0 %369 }
 0x15a   : > { %4728 = vst [vmem:[#allocation23_spill] sm:$0xff] %v2888_v61 }
 0x15c   : > { %v2894_v0 = vpop.permute.xlu1 %374 }
 0x15d   : > { %v2898_v3 = vpop.permute.xlu0 %379 }
 0x15e   : > { %4731 = vst [vmem:[#allocation26_spill] sm:$0xff] %v2898_v3 }
 0x160   : > { %v2904_v6 = vpop.permute.xlu1 %384 }
 0x161   : > { %4733 = vst [vmem:[#allocation28_spill] sm:$0xff] %v2904_v6  ;;  %v2908_v8 = vpop.permute.xlu0 %389 }
 0x162   : > { %4734 = vst [vmem:[#allocation29_spill] sm:$0xff] %v2908_v8 }
 0x164   : > { %v2800_v16 = vpop.f32.mrb[0].mxu0 }
 0x165   : > { %v2802_v17 = vpop.f32.mrb[1].mxu0 }
 0x166   : > { %4712 = vst [vmem:[#allocation7_spill] sm:$0xff] %v2802_v17 }
 0x168   : > { %v978_v2 = vpop.f32.mrb[2].mxu0 }
 0x169   : > { %v2808_v20 = vadd.f32 %v978_v2, %v260_v10  ;;  %v980_v21 = vpop.f32.mrb[3].mxu0 }
 0x16a   : > { %v2810_v22 = vadd.f32 %v980_v21, %v260_v10 }
 0x16b   : > { %4714 = vst [vmem:[#allocation9_spill] sm:$0xff] %v2808_v20 }
 0x16c   : > { %4715 = vst [vmem:[#allocation10_spill] sm:$0xff] %v2810_v22  ;;  %v2812_v23 = vpop.f32.mrb[4].mxu0 }
 0x16d   : > { %v2816_v25 = vpop.f32.mrb[5].mxu0 }
 0x16e   : > { %4716 = vst [vmem:[#allocation11_spill] sm:$0xff] %v2816_v25 }
 0x170   : > { %v2820_v27 = vpop.f32.mrb[6].mxu0 }
 0x171   : > { %v2822_v28 = vpop.f32.mrb[7].mxu0 }
 0x172   : > { %4717 = vst [vmem:[#allocation12_spill] sm:$0xff] %v2822_v28 }
 0x174   : > { %v2826_v30 = vpop.f32.mrb[8].mxu0 }
 0x175   : > { %v2830_v32 = vpop.f32.mrb[9].mxu0 }
 0x176   : > { %4718 = vst [vmem:[#allocation13_spill] sm:$0xff] %v2830_v32 }
 0x178   : > { %v2832_v33 = vpop.f32.mrb[10].mxu0 }
 0x179   : > { %v2836_v35 = vpop.f32.mrb[11].mxu0 }
 0x17a   : > { %4719 = vst [vmem:[#allocation14_spill] sm:$0xff] %v2836_v35 }
 0x17c   : > { %v2840_v37 = vpop.f32.mrb[12].mxu0 }
 0x17d   : > { %v2842_v38 = vpop.f32.mrb[13].mxu0 }
 0x17e   : > { %4720 = vst [vmem:[#allocation15_spill] sm:$0xff] %v2842_v38 }
 0x180   : > { %v2846_v40 = vpop.f32.mrb[14].mxu0 }
 0x181   : > { %v2850_v42 = vpop.f32.mrb[15].mxu0 }
 0x182   : > { %4721 = vst [vmem:[#allocation16_spill] sm:$0xff] %v2850_v42 }
 0x184   : > { %v2852_v43 = vpop.f32.mrb[16].mxu0 }
 0x185   : > { %v2856_v45 = vpop.f32.mrb[17].mxu0 }
 0x186   : > { %4722 = vst [vmem:[#allocation17_spill] sm:$0xff] %v2856_v45 }
 0x188   : > { %v2860_v47 = vpop.f32.mrb[18].mxu0 }
 0x189   : > { %v2862_v48 = vpop.f32.mrb[19].mxu0 }
 0x18a   : > { %4723 = vst [vmem:[#allocation18_spill] sm:$0xff] %v2862_v48 }
 0x18c   : > { %v2866_v50 = vpop.f32.mrb[20].mxu0 }
 0x18d   : > { %v2870_v52 = vpop.f32.mrb[21].mxu0 }
 0x18e   : > { %4724 = vst [vmem:[#allocation19_spill] sm:$0xff] %v2870_v52 }
 0x190   : > { %v2872_v53 = vpop.f32.mrb[22].mxu0 }
 0x191   : > { %v2876_v55 = vpop.f32.mrb[23].mxu0 }
 0x192   : > { %4725 = vst [vmem:[#allocation20_spill] sm:$0xff] %v2876_v55 }
 0x194   : > { %v2880_v57 = vpop.f32.mrb[24].mxu0 }
 0x195   : > { %v2882_v58 = vpop.f32.mrb[25].mxu0 }
 0x196   : > { %4727 = vst [vmem:[#allocation22_spill] sm:$0xff] %v2882_v58 }
 0x198   : > { %v2886_v60 = vpop.f32.mrb[26].mxu0 }
 0x199   : > { %v2890_v62 = vpop.f32.mrb[27].mxu0 }
 0x19a   : > { %4729 = vst [vmem:[#allocation24_spill] sm:$0xff] %v2890_v62  ;;  %v2916_v62 = vpop.permute.xlu1 %394 }
 0x19b   : > { %4737 = vst [vmem:[#allocation32_spill] sm:$0xff] %v2916_v62 }
 0x19c   : > { %v2892_v63 = vpop.f32.mrb[28].mxu0 }
 0x19d   : > { %v2896_v1 = vpop.f32.mrb[29].mxu0 }
 0x19e   : > { %4730 = vst [vmem:[#allocation25_spill] sm:$0xff] %v2896_v1 }
 0x1a0   : > { %v2900_v4 = vpop.f32.mrb[30].mxu0 }
 0x1a1   : > { %v2902_v5 = vpop.f32.mrb[31].mxu0 }
 0x1a2   : > { %4732 = vst [vmem:[#allocation27_spill] sm:$0xff] %v2902_v5  ;;  %v2922_v5 = vpop.permute.xlu0 %399 }
 0x1a3   : > { %4740 = vst [vmem:[#allocation35_spill] sm:$0xff] %v2922_v5 }
 0x1a4   : > { %v2906_v7 = vpop.f32.mrb[32].mxu0 }
 0x1a5   : > { %v1164_v9 = vpop.f32.mrb[0].mxu1  ;;  %v2910_v10 = vpop.f32.mrb[33].mxu0 }
 0x1a6   : > { %4735 = vst [vmem:[#allocation30_spill] sm:$0xff] %v2910_v10  ;;  %v2912_v2 = vpop.f32.mrb[1].mxu1  ;;  %v2930_v10 = vpop.permute.xlu1 %404 }
 0x1a7   : > { %4736 = vst [vmem:[#allocation31_spill] sm:$0xff] %v2912_v2  ;;  %4743 = vst [vmem:[#allocation38_spill] sm:$0xff] %v2930_v10  ;;  %v2936_v45 = vpop.permute.xlu0 %409 }
 0x1a8   : > { %v2914_v21 = vpop.f32.mrb[34].mxu0  ;;  %4745 = vst [vmem:[#allocation40_spill] sm:$0xff] %v2936_v45 }
 0x1a9   : > { %v1170_v55 = vpop.f32.mrb[2].mxu1  ;;  %v2918_v48 = vpop.f32.mrb[35].mxu0 }
 0x1aa   : > { %4738 = vst [vmem:[#allocation33_spill] sm:$0xff] %v2918_v48  ;;  %v2920_v1 = vpop.f32.mrb[3].mxu1  ;;  %v2944_v17 = vpop.permute.xlu1 %414 }
 0x1ab   : > { %4739 = vst [vmem:[#allocation34_spill] sm:$0xff] %v2920_v1 }
 0x1ac   : > { %v2924_v42 = vpop.f32.mrb[36].mxu0 }
 0x1ad   : > { %v1176_v22 = vpop.f32.mrb[4].mxu1  ;;  %v2926_v58 = vpop.f32.mrb[37].mxu0 }
 0x1ae   : > { %4741 = vst [vmem:[#allocation36_spill] sm:$0xff] %v2926_v58  ;;  %v2928_v35 = vpop.f32.mrb[5].mxu1  ;;  %v2956_v45 = vpop.permute.xlu1 %424 }
 0x1af   : > { %4742 = vst [vmem:[#allocation37_spill] sm:$0xff] %v2928_v35  ;;  %v2948_v35 = vpop.permute.xlu0 %419  ;;  %4752 = vst [vmem:[#allocation47_spill] sm:$0xff] %v2956_v45 }
 0x1b0   : > { %v2932_v2 = vpop.f32.mrb[38].mxu0 }
 0x1b1   : > { %v1182_v52 = vpop.f32.mrb[6].mxu1  ;;  %v2934_v28 = vpop.f32.mrb[39].mxu0 }
 0x1b2   : > { %4744 = vst [vmem:[#allocation39_spill] sm:$0xff] %v2934_v28  ;;  %v2938_v48 = vpop.f32.mrb[7].mxu1  ;;  %v2980_v56 = vpop.permute.xlu1 %434 }
 0x1b3   : > { %4746 = vst [vmem:[#allocation41_spill] sm:$0xff] %v2938_v48 }
 0x1b4   : > { %v2940_v1 = vpop.f32.mrb[40].mxu0 }
 0x1b5   : > { %v1188_v38 = vpop.f32.mrb[8].mxu1  ;;  %v2942_v32 = vpop.f32.mrb[41].mxu0 }
 0x1b6   : > { %4747 = vst [vmem:[#allocation42_spill] sm:$0xff] %v2942_v32  ;;  %v2946_v58 = vpop.f32.mrb[9].mxu1  ;;  %v2962_v32 = vpop.permute.xlu0 %429 }
 0x1b7   : > { %4748 = vst [vmem:[#allocation43_spill] sm:$0xff] %v2946_v58  ;;  %v2968_v58 = vadd.f32 %v2812_v23, %v2790_v11 }
 0x1b8   : > { %v2950_v25 = vpop.f32.mrb[42].mxu0 }
 0x1b9   : > { %4749 = vst [vmem:[#allocation44_spill] sm:$0xff] %v2950_v25  ;;  %v1194_v5 = vpop.f32.mrb[10].mxu1  ;;  %v2952_v8 = vpop.f32.mrb[43].mxu0  ;;  %4755 = vst [vmem:[#allocation50_spill] sm:$0xff] %v2968_v58  ;;  %v2978_v25 = vadd.f32 %v2800_v16, %v2794_v13 }
 0x1ba   : > { %4750 = vst [vmem:[#allocation45_spill] sm:$0xff] %v2952_v8  ;;  %v2954_v28 = vpop.f32.mrb[11].mxu1  ;;  %v2990_v11 = vpop.permute.xlu0 %439 }
 0x1bb   : > { %4751 = vst [vmem:[#allocation46_spill] sm:$0xff] %v2954_v28  ;;  %4758 = vst [vmem:[#allocation53_spill] sm:$0xff] %v2978_v25  ;;  %v1355_v23 = vmin.f32 %v2978_v25, %v2968_v58  ;;  %v3014_v25 = vpop.permute.xlu1 %444 }
 0x1bc   : > { %v2958_v48 = vpop.f32.mrb[44].mxu0 }
 0x1bd   : > { %v1200_v3 = vpop.f32.mrb[12].mxu1  ;;  %v2960_v10 = vpop.f32.mrb[45].mxu0 }
 0x1be   : > { %4753 = vst [vmem:[#allocation48_spill] sm:$0xff] %v2960_v10  ;;  %v2964_v61 = vpop.f32.mrb[13].mxu1  ;;  %v2984_v10 = vadd.f32 %v2826_v30, %v2796_v14  ;;  %v3003_v30 = vadd.f32 %v2852_v43, %v2814_v24  ;;  %v3022_v43 = vadd.f32 %v1164_v9, %v2944_v17  ;;  %v3040_v9 = vadd.f32 %v2880_v57, %v2834_v34 }
 0x1bf   : > { %4754 = vst [vmem:[#allocation49_spill] sm:$0xff] %v2964_v61  ;;  %v3058_v57 = vadd.f32 %v2892_v63, %v2844_v39 }
 0x1c0   : > { %v2970_v62 = vpop.f32.mrb[46].mxu0  ;;  %4759 = vst [vmem:[#allocation54_spill] sm:$0xff] %v2984_v10  ;;  %v1357_v6 = vmin.f32 %v1355_v23, %v2984_v10  ;;  %4763 = vst [vmem:[#allocation58_spill] sm:$0xff] %v3003_v30  ;;  %v3019_v23 = vadd.f32 %v2866_v50, %v2824_v29 }
 0x1c1   : > { %4756 = vst [vmem:[#allocation51_spill] sm:$0xff] %v2970_v62  ;;  %v2972_v8 = vpop.f32.mrb[14].mxu1  ;;  %v2974_v28 = vpop.f32.mrb[47].mxu0  ;;  %4768 = vst [vmem:[#allocation63_spill] sm:$0xff] %v3022_v43 }
 0x1c2   : > { %4757 = vst [vmem:[#allocation52_spill] sm:$0xff] %v2974_v28  ;;  %v2986_v61 = vpop.f32.mrb[15].mxu1  ;;  %v2994_v28 = vadd.f32 %v2840_v37, %v2804_v18  ;;  %v3012_v37 = vadd.f32 %v2820_v27, %v2792_v12  ;;  %4767 = vst [vmem:[#allocation62_spill] sm:$0xff] %v3019_v23  ;;  %v3031_v27 = vadd.f32 %v2832_v33, %v2798_v15 }
 0x1c3   : > { %4760 = vst [vmem:[#allocation55_spill] sm:$0xff] %v2986_v61  ;;  %v3006_v61 = vadd.f32 %v1170_v55, %v2948_v35  ;;  %v3025_v55 = vadd.f32 %v1176_v22, %v2956_v45  ;;  %4772 = vst [vmem:[#allocation67_spill] sm:$0xff] %v3040_v9 }
 0x1c4   : > { %4761 = vst [vmem:[#allocation56_spill] sm:$0xff] %v2994_v28  ;;  %v2996_v62 = vpop.f32.mrb[48].mxu0  ;;  %4766 = vst [vmem:[#allocation61_spill] sm:$0xff] %v3012_v37  ;;  %v1359_v18 = vmin.f32 %v1357_v6, %v2994_v28  ;;  %v3035_v6 = vpop.permute.xlu0 %449  ;;  %v3045_v28 = vadd.f32 %v1182_v52, %v2962_v32  ;;  %v1356_v33 = vmin.f32 %v2808_v20, %v3012_v37 }
 0x1c5   : > { %v1212_v16 = vpop.f32.mrb[16].mxu1  ;;  %v2998_v13 = vpop.f32.mrb[49].mxu0  ;;  %4764 = vst [vmem:[#allocation59_spill] sm:$0xff] %v3006_v61  ;;  %4769 = vst [vmem:[#allocation64_spill] sm:$0xff] %v3025_v55  ;;  %v1385_v22 = vmin.f32 %v3006_v61, %v3022_v43  ;;  %v3062_v52 = vadd.f32 %v1188_v38, %v2980_v56  ;;  %v3067_v37 = vadd.f32 %v2860_v47, %v2818_v26 }
 0x1c6   : > { %4762 = vst [vmem:[#allocation57_spill] sm:$0xff] %v2998_v13  ;;  %v3008_v58 = vpop.f32.mrb[17].mxu1  ;;  %4770 = vst [vmem:[#allocation65_spill] sm:$0xff] %v3031_v27  ;;  %v1361_v50 = vmin.f32 %v1359_v18, %v3003_v30  ;;  %v1358_v30 = vmin.f32 %v1356_v33, %v3031_v27 }
 0x1c7   : > { %4765 = vst [vmem:[#allocation60_spill] sm:$0xff] %v3008_v58  ;;  %4773 = vst [vmem:[#allocation68_spill] sm:$0xff] %v3045_v28  ;;  %v1387_v61 = vmin.f32 %v1385_v22, %v3025_v55  ;;  %v3076_v22 = vadd.f32 %v2906_v7, %v2854_v44  ;;  %v3080_v55 = vadd.f32 %v1194_v5, %v2990_v11 }
 0x1c8   : > { %v3027_v10 = vpop.f32.mrb[50].mxu0  ;;  %v1363_v18 = vmin.f32 %v1361_v50, %v3019_v23  ;;  %4775 = vst [vmem:[#allocation70_spill] sm:$0xff] %v3058_v57  ;;  %4776 = vst [vmem:[#allocation71_spill] sm:$0xff] %v3062_v52  ;;  %v3071_v50 = vpop.permute.xlu1 %454  ;;  %v3087_v23 = vadd.f32 %v2872_v53, %v2828_v31  ;;  %v3094_v7 = vadd.f32 %v2924_v42, %v2864_v49 }
 0x1c9   : > { %v1218_v13 = vpop.f32.mrb[18].mxu1  ;;  %v3033_v58 = vpop.f32.mrb[51].mxu0  ;;  %4777 = vst [vmem:[#allocation72_spill] sm:$0xff] %v3067_v37  ;;  %4778 = vst [vmem:[#allocation73_spill] sm:$0xff] %v3076_v22  ;;  %v1389_v38 = vmin.f32 %v1387_v61, %v3045_v28  ;;  %v3098_v5 = vadd.f32 %v1200_v3, %v3014_v25  ;;  %v3103_v53 = vadd.f32 %v2886_v60, %v2838_v36 }
 0x1ca   : > { %4771 = vst [vmem:[#allocation66_spill] sm:$0xff] %v3033_v58  ;;  %v3047_v45 = vpop.f32.mrb[19].mxu1  ;;  %v3053_v58 = vadd.f32 %v2846_v40, %v2806_v19  ;;  %v1365_v63 = vmin.f32 %v1363_v18, %v3040_v9  ;;  %4779 = vst [vmem:[#allocation74_spill] sm:$0xff] %v3080_v55  ;;  %v3089_v27 = vpop.permute.xlu0 %459  ;;  %v3110_v42 = vadd.f32 %v2940_v1, %v2874_v54 }
 0x1cb   : > { %4780 = vst [vmem:[#allocation75_spill] sm:$0xff] %v3087_v23  ;;  %4781 = vst [vmem:[#allocation76_spill] sm:$0xff] %v3094_v7  ;;  %v1391_v61 = vmin.f32 %v1389_v38, %v3062_v52  ;;  %v3115_v3 = vadd.f32 %v2972_v8, %v3035_v6  ;;  %v3122_v52 = vadd.f32 %v2900_v4, %v2848_v41 }
 0x1cc   : > { %4774 = vst [vmem:[#allocation69_spill] sm:$0xff] %v3053_v58  ;;  %v1128_v43 = vpop.f32.mrb[52].mxu0  ;;  %v1360_v47 = vmin.f32 %v1358_v30, %v3053_v58  ;;  %v1367_v18 = vmin.f32 %v1365_v63, %v3058_v57  ;;  %4782 = vst [vmem:[#allocation77_spill] sm:$0xff] %v3098_v5  ;;  %v3124_v57 = vpop.permute.xlu1 %464  ;;  %v3129_v1 = vadd.f32 %v2958_v48, %v2884_v59 }
 0x1cd   : > { %v1224_v40 = vpop.f32.mrb[20].mxu1  ;;  %v3069_v20 = vpop.f32.mrb[53].mxu0  ;;  %4783 = vst [vmem:[#allocation78_spill] sm:$0xff] %v3103_v53  ;;  %4785 = vst [vmem:[#allocation80_spill] sm:$0xff] %v3110_v42  ;;  %v1393_v38 = vmin.f32 %v1391_v61, %v3080_v55  ;;  %v3133_v8 = vadd.f32 %v1212_v16, %v3071_v50  ;;  %v3138_v4 = vadd.f32 %v2914_v21, %v2858_v46 }
 0x1ce   : > { %v3082_v33 = vpop.f32.mrb[21].mxu1  ;;  %v1362_v30 = vmin.f32 %v1360_v47, %v3067_v37  ;;  %v1369_v63 = vmin.f32 %v1367_v18, %v3076_v22  ;;  %4786 = vst [vmem:[#allocation81_spill] sm:$0xff] %v3115_v3  ;;  %4787 = vst [vmem:[#allocation82_spill] sm:$0xff] %v3122_v52  ;;  %v3148_v16 = vadd.f32 %v2996_v62, %v2894_v0  ;;  %v4799_v37 = vld [vmem:[#allocation21_spill] sm:$0xff] }
 0x1cf   : > { %4788 = vst [vmem:[#allocation83_spill] sm:$0xff] %v3129_v1  ;;  %v1395_v61 = vmin.f32 %v1393_v38, %v3098_v5  ;;  %4789 = vst [vmem:[#allocation84_spill] sm:$0xff] %v3133_v8  ;;  %v3151_v38 = vadd.f32 %v1218_v13, %v3089_v27  ;;  %v3158_v5 = vadd.f32 %v2932_v2, %v2868_v51 }
 0x1d0   : > { %v1134_v28 = vpop.f32.mrb[54].mxu0  ;;  %v1364_v60 = vmin.f32 %v1362_v30, %v3087_v23  ;;  %v1371_v18 = vmin.f32 %v1369_v63, %v3094_v7  ;;  %4790 = vst [vmem:[#allocation85_spill] sm:$0xff] %v3138_v4  ;;  %v3142_v63 = vpop.permute.xlu0 %469  ;;  %4792 = vst [vmem:[#allocation87_spill] sm:$0xff] %v3148_v16  ;;  %v3166_v62 = vadd.f32 %v1224_v40, %v3124_v57 }
 0x1d1   : > { %v1230_v9 = vpop.f32.mrb[22].mxu1  ;;  %v3105_v58 = vpop.f32.mrb[55].mxu0  ;;  %v1397_v7 = vmin.f32 %v1395_v61, %v3115_v3  ;;  %4793 = vst [vmem:[#allocation88_spill] sm:$0xff] %v3151_v38  ;;  %4795 = vst [vmem:[#allocation90_spill] sm:$0xff] %v3158_v5  ;;  %v4796_v61 = vld [vmem:[#allocation28_spill] sm:$0xff] }
 0x1d2   : > { %4784 = vst [vmem:[#allocation79_spill] sm:$0xff] %v3105_v58  ;;  %v3117_v47 = vpop.f32.mrb[23].mxu1  ;;  %v1366_v30 = vmin.f32 %v1364_v60, %v3103_v53  ;;  %v1373_v48 = vmin.f32 %v1371_v18, %v3110_v42  ;;  %v3163_v3 = vadd.f32 %v1128_v43, %v4796_v61  ;;  %4798 = vst [vmem:[#allocation91_spill] sm:$0xff] %v3166_v62  ;;  %v4800_v58 = vld [vmem:[#allocation44_spill] sm:$0xff] }
 0x1d3   : > { %v1399_v18 = vmin.f32 %v1397_v7, %v3133_v8  ;;  %v3178_v43 = vadd.f32 %v1230_v9, %v3142_v63  ;;  %v4804_v8 = vld [vmem:[#allocation32_spill] sm:$0xff] }
 0x1d4   : > { %v1140_v55 = vpop.f32.mrb[56].mxu0  ;;  %v1368_v21 = vmin.f32 %v1366_v30, %v3122_v52  ;;  %v1375_v53 = vmin.f32 %v1373_v48, %v3129_v1  ;;  %4797 = vst [vmem:[#allocation28_spill] sm:$0xff] %v3163_v3  ;;  %v3171_v30 = vadd.f32 %v4800_v58, %v4799_v37 }
 0x1d5   : > { %v1236_v22 = vpop.f32.mrb[24].mxu1  ;;  %v3140_v23 = vpop.f32.mrb[57].mxu0  ;;  %v1386_v7 = vmin.f32 %v3151_v38, %v1399_v18  ;;  %4803 = vst [vmem:[#allocation92_spill] sm:$0xff] %v3178_v43  ;;  %v3181_v40 = vadd.f32 %v1140_v55, %v4804_v8  ;;  %v4814_v8 = vld [vmem:[#allocation26_spill] sm:$0xff] }
 0x1d6   : > { %4791 = vst [vmem:[#allocation86_spill] sm:$0xff] %v3140_v23  ;;  %v3153_v60 = vpop.f32.mrb[25].mxu1  ;;  %v1370_v42 = vmin.f32 %v1368_v21, %v3138_v4  ;;  %4801 = vst [vmem:[#allocation21_spill] sm:$0xff] %v3171_v30  ;;  %v1377_v48 = vmin.f32 %v1375_v53, %v3148_v16  ;;  %v3185_v21 = vpop.permute.xlu1 %474  ;;  %v4811_v16 = vld [vmem:[#allocation38_spill] sm:$0xff] }
 0x1d7   : > { %4794 = vst [vmem:[#allocation89_spill] sm:$0xff] %v3153_v60  ;;  %4805 = vst [vmem:[#allocation93_spill] sm:$0xff] %v3181_v40  ;;  %v3188_v4 = vpop.permute.xlu0 %479  ;;  %v4807_v60 = vld [vmem:[#allocation23_spill] sm:$0xff]  ;;  %v1388_v9 = vmin.f32 %v1386_v7, %v3166_v62  ;;  %v3197_v18 = vadd.f32 %v1236_v22, %v3185_v21 }
 0x1d8   : > { %v1146_v13 = vpop.f32.mrb[58].mxu0  ;;  %v1372_v58 = vmin.f32 %v1370_v42, %v3158_v5  ;;  %v1379_v53 = vmin.f32 %v1377_v48, %v3163_v3 }
 0x1d9   : > { %v1242_v52 = vpop.f32.mrb[26].mxu1  ;;  %v3173_v2 = vpop.f32.mrb[59].mxu0  ;;  %v1390_v48 = vmin.f32 %v1388_v9, %v3178_v43  ;;  %v4820_v9 = vld [vmem:[#allocation35_spill] sm:$0xff] }
 0x1da   : > { %4802 = vst [vmem:[#allocation44_spill] sm:$0xff] %v3173_v2  ;;  %v3183_v1 = vpop.f32.mrb[27].mxu1  ;;  %v4808_v2 = vld [vmem:[#allocation51_spill] sm:$0xff]  ;;  %v1374_v38 = vmin.f32 %v1372_v58, %v3171_v30  ;;  %v1381_v7 = vmin.f32 %v1379_v53, %v3181_v40  ;;  %v3212_v22 = vadd.f32 %v1242_v52, %v3188_v4  ;;  %v3226_v52 = vadd.f32 %v1146_v13, %v4820_v9 }
 0x1db   : > { %4806 = vst [vmem:[#allocation94_spill] sm:$0xff] %v3183_v1  ;;  %v3192_v23 = vadd.f32 %v4808_v2, %v4807_v60  ;;  %4810 = vst [vmem:[#allocation51_spill] sm:$0xff] %v3197_v18  ;;  %v3207_v2 = vadd.f32 %v3027_v10, %v4814_v8  ;;  %v1392_v30 = vmin.f32 %v1390_v48, %v3197_v18 }
 0x1dc   : > { %v1152_v55 = vpop.f32.mrb[60].mxu0  ;;  %4816 = vst [vmem:[#allocation98_spill] sm:$0xff] %v3212_v22  ;;  %4821 = vst [vmem:[#allocation35_spill] sm:$0xff] %v3226_v52 }
 0x1dd   : > { %4809 = vst [vmem:[#allocation23_spill] sm:$0xff] %v3192_v23  ;;  %v3201_v1 = vadd.f32 %v1152_v55, %v4811_v16  ;;  %v1248_v42 = vpop.f32.mrb[28].mxu1  ;;  %v3203_v5 = vpop.f32.mrb[61].mxu0  ;;  %4815 = vst [vmem:[#allocation97_spill] sm:$0xff] %v3207_v2  ;;  %v1376_v58 = vmin.f32 %v1374_v38, %v3192_v23  ;;  %v4818_v55 = vld [vmem:[#allocation29_spill] sm:$0xff]  ;;  %v1394_v43 = vmin.f32 %v1392_v30, %v3212_v22  ;;  %v4823_v23 = vld [vmem:[#allocation40_spill] sm:$0xff] }
 0x1de   : > { %4813 = vst [vmem:[#allocation96_spill] sm:$0xff] %v3203_v5  ;;  %v3214_v62 = vpop.f32.mrb[29].mxu1  ;;  %v3218_v3 = vadd.f32 %v1134_v28, %v4818_v55  ;;  %v4828_v30 = vld [vmem:[#allocation11_spill] sm:$0xff] }
 0x1df   : > { %4812 = vst [vmem:[#allocation95_spill] sm:$0xff] %v3201_v1  ;;  %4817 = vst [vmem:[#allocation99_spill] sm:$0xff] %v3214_v62  ;;  %v1383_v5 = vmin.f32 %v1381_v7, %v3201_v1  ;;  %v1378_v53 = vmin.f32 %v1376_v58, %v3207_v2  ;;  %v3235_v7 = vpop.permute.xlu1 %484  ;;  %v4827_v2 = vld [vmem:[#allocation5_spill] sm:$0xff] }
 0x1e0   : > { %4819 = vst [vmem:[#allocation29_spill] sm:$0xff] %v3218_v3  ;;  %v1158_v10 = vpop.f32.mrb[62].mxu0  ;;  %v3239_v58 = vadd.f32 %v1248_v42, %v3235_v7  ;;  %v3245_v22 = vadd.f32 %v4828_v30, %v4827_v2  ;;  %v3257_v42 = vpop.permute.xlu0 %489  ;;  %v4836_v30 = vld [vmem:[#allocation8_spill] sm:$0xff] }
 0x1e1   : > { %v1254_v8 = vpop.f32.mrb[30].mxu1  ;;  %v3222_v16 = vpop.f32.mrb[63].mxu0  ;;  %v1380_v28 = vmin.f32 %v1378_v53, %v3218_v3  ;;  %v1396_v38 = vmin.f32 %v1394_v43, %v1383_v5  ;;  %v3233_v48 = vadd.f32 %v1158_v10, %v4823_v23  ;;  %v4830_v43 = vld [vmem:[#allocation6_spill] sm:$0xff]  ;;  %v4831_v10 = vld [vmem:[#allocation7_spill] sm:$0xff] }
 0x1e2   : > { %v3229_v40 = vpop.f32.mrb[31].mxu1  ;;  %4825 = vst [vmem:[#allocation101_spill] sm:$0xff] %v3239_v58  ;;  %4829 = vst [vmem:[#allocation5_spill] sm:$0xff] %v3245_v22  ;;  %v3251_v3 = vadd.f32 %v4831_v10, %v4830_v43 }
 0x1e3   : > { %4822 = vst [vmem:[#allocation100_spill] sm:$0xff] %v3229_v40  ;;  %4824 = vst [vmem:[#allocation40_spill] sm:$0xff] %v3233_v48  ;;  %v1382_v1 = vmin.f32 %v1380_v28, %v3226_v52  ;;  %v1398_v53 = vmin.f32 %v1396_v38, %v3239_v58  ;;  %v4833_v40 = vld [vmem:[#allocation13_spill] sm:$0xff]  ;;  %v4837_v38 = vld [vmem:[#allocation15_spill] sm:$0xff] }
 0x1e4   : > { %4832 = vst [vmem:[#allocation11_spill] sm:$0xff] %v3251_v3  ;;  %v3255_v28 = vadd.f32 %v4833_v40, %v2796_v14  ;;  %v1424_v2 = vmin.f32 %v3251_v3, %v3245_v22  ;;  %v3265_v58 = vadd.f32 %v4837_v38, %v4836_v30  ;;  %v4839_v14 = vld [vmem:[#allocation17_spill] sm:$0xff]  ;;  %v4843_v22 = vld [vmem:[#allocation12_spill] sm:$0xff]  ;;  %v3283_v30 = vadd.f32 %v1254_v8, %v3257_v42  ;;  %v4853_v8 = vld [vmem:[#allocation14_spill] sm:$0xff] }
 0x1e5   : > { %v1260_v18 = vpop.f32.mrb[32].mxu1  ;;  %v1384_v5 = vmin.f32 %v1382_v1, %v3233_v48  ;;  %v3267_v1 = vpop.permute.xlu1 %494  ;;  %v3272_v40 = vadd.f32 %v4839_v14, %v2814_v24  ;;  %v4841_v48 = vld [vmem:[#allocation34_spill] sm:$0xff]  ;;  %v3280_v3 = vadd.f32 %v4843_v22, %v2792_v12  ;;  %v4846_v24 = vld [vmem:[#allocation19_spill] sm:$0xff]  ;;  %v4851_v12 = vld [vmem:[#allocation37_spill] sm:$0xff] }
 0x1e6   : > { %v3241_v13 = vpop.f32.mrb[33].mxu1  ;;  %4834 = vst [vmem:[#allocation6_spill] sm:$0xff] %v3255_v28  ;;  %4838 = vst [vmem:[#allocation13_spill] sm:$0xff] %v3265_v58  ;;  %v1426_v10 = vmin.f32 %v1424_v2, %v3255_v28  ;;  %v3276_v62 = vadd.f32 %v4841_v48, %v2948_v35  ;;  %v3292_v2 = vadd.f32 %v4846_v24, %v2824_v29  ;;  %v4848_v35 = vld [vmem:[#allocation31_spill] sm:$0xff]  ;;  %v4855_v29 = vld [vmem:[#allocation22_spill] sm:$0xff] }
 0x1e7   : > { %4826 = vst [vmem:[#allocation102_spill] sm:$0xff] %v3241_v13  ;;  %v1400_v43 = vmin.f32 %v1398_v53, %v1384_v5  ;;  %4840 = vst [vmem:[#allocation8_spill] sm:$0xff] %v3272_v40  ;;  %v3288_v5 = vpop.permute.xlu0 %499  ;;  %v3296_v48 = vadd.f32 %v4848_v35, %v2944_v17  ;;  %v4850_v14 = vld [vmem:[#allocation47_spill] sm:$0xff]  ;;  %v3304_v28 = vadd.f32 %v4853_v8, %v2798_v15  ;;  %v4857_v35 = vld [vmem:[#allocation41_spill] sm:$0xff] }
 0x1e8   : > { %4842 = vst [vmem:[#allocation15_spill] sm:$0xff] %v3276_v62  ;;  %4844 = vst [vmem:[#allocation17_spill] sm:$0xff] %v3280_v3  ;;  %v1428_v53 = vmin.f32 %v1426_v10, %v3265_v58  ;;  %v3300_v22 = vadd.f32 %v4851_v12, %v4850_v14  ;;  %v3312_v24 = vadd.f32 %v4855_v29, %v2834_v34  ;;  %v4859_v15 = vld [vmem:[#allocation10_spill] sm:$0xff] }
 0x1e9   : > { %v1266_v52 = vpop.f32.mrb[34].mxu1  ;;  %4847 = vst [vmem:[#allocation12_spill] sm:$0xff] %v3292_v2  ;;  %4849 = vst [vmem:[#allocation19_spill] sm:$0xff] %v3296_v48  ;;  %v1401_v10 = vmin.f32 %v3283_v30, %v1400_v43  ;;  %v1454_v17 = vmin.f32 %v3276_v62, %v3296_v48  ;;  %v3318_v14 = vadd.f32 %v4857_v35, %v2962_v32  ;;  %v4860_v43 = vld [vmem:[#allocation16_spill] sm:$0xff]  ;;  %v4862_v62 = vld [vmem:[#allocation25_spill] sm:$0xff] }
 0x1ea   : > { %v3259_v13 = vpop.f32.mrb[35].mxu1  ;;  %4852 = vst [vmem:[#allocation31_spill] sm:$0xff] %v3300_v22  ;;  %4854 = vst [vmem:[#allocation47_spill] sm:$0xff] %v3304_v28  ;;  %v1430_v58 = vmin.f32 %v1428_v53, %v3272_v40  ;;  %v1425_v8 = vmin.f32 %v4859_v15, %v3280_v3  ;;  %v3324_v53 = vadd.f32 %v4860_v43, %v2806_v19  ;;  %v4864_v35 = vld [vmem:[#allocation43_spill] sm:$0xff]  ;;  %v4866_v43 = vld [vmem:[#allocation18_spill] sm:$0xff] }
 0x1eb   : > { %4835 = vst [vmem:[#allocation7_spill] sm:$0xff] %v3259_v13  ;;  %4856 = vst [vmem:[#allocation37_spill] sm:$0xff] %v3312_v24  ;;  %v3327_v40 = vadd.f32 %v1260_v18, %v3267_v1  ;;  %v3334_v48 = vadd.f32 %v4862_v62, %v2844_v39  ;;  %v1456_v32 = vmin.f32 %v1454_v17, %v3300_v22  ;;  %v4868_v62 = vld [vmem:[#allocation30_spill] sm:$0xff] }
 0x1ec   : > { %4858 = vst [vmem:[#allocation14_spill] sm:$0xff] %v3318_v14  ;;  %4861 = vst [vmem:[#allocation22_spill] sm:$0xff] %v3324_v53  ;;  %v1432_v29 = vmin.f32 %v1430_v58, %v3292_v2  ;;  %v3339_v3 = vadd.f32 %v4864_v35, %v2980_v56  ;;  %v1427_v19 = vmin.f32 %v1425_v8, %v3304_v28  ;;  %v3350_v2 = vpop.permute.xlu0 %509  ;;  %v4870_v8 = vld [vmem:[#allocation46_spill] sm:$0xff] }
 0x1ed   : > { %v1272_v13 = vpop.f32.mrb[36].mxu1  ;;  %4863 = vst [vmem:[#allocation41_spill] sm:$0xff] %v3334_v48  ;;  %v3344_v18 = vadd.f32 %v4866_v43, %v2818_v26  ;;  %v1402_v15 = vmin.f32 %v3327_v40, %v1401_v10  ;;  %v3348_v58 = vadd.f32 %v1266_v52, %v3288_v5  ;;  %v3355_v17 = vadd.f32 %v4868_v62, %v2854_v44  ;;  %v4872_v52 = vld [vmem:[#allocation20_spill] sm:$0xff] }
 0x1ee   : > { %v3285_v38 = vpop.f32.mrb[37].mxu1  ;;  %4865 = vst [vmem:[#allocation16_spill] sm:$0xff] %v3339_v3  ;;  %v1434_v39 = vmin.f32 %v1432_v29, %v3312_v24  ;;  %v1458_v56 = vmin.f32 %v1456_v32, %v3318_v14  ;;  %v3360_v35 = vadd.f32 %v4870_v8, %v2990_v11  ;;  %v1429_v10 = vmin.f32 %v1427_v19, %v3324_v53  ;;  %v4874_v62 = vld [vmem:[#allocation36_spill] sm:$0xff]  ;;  %v4876_v19 = vld [vmem:[#allocation49_spill] sm:$0xff] }
 0x1ef   : > { %4845 = vst [vmem:[#allocation34_spill] sm:$0xff] %v3285_v38  ;;  %v3308_v38 = vpop.permute.xlu1 %504  ;;  %4867 = vst [vmem:[#allocation25_spill] sm:$0xff] %v3344_v18  ;;  %v3365_v43 = vadd.f32 %v4872_v52, %v2828_v31  ;;  %v3377_v11 = vadd.f32 %v4874_v62, %v2864_v49  ;;  %v3382_v14 = vadd.f32 %v4876_v19, %v3014_v25  ;;  %v4881_v62 = vld [vmem:[#allocation42_spill] sm:$0xff]  ;;  %v4883_v19 = vld [vmem:[#allocation55_spill] sm:$0xff] }
 0x1f0   : > { %4869 = vst [vmem:[#allocation43_spill] sm:$0xff] %v3355_v17  ;;  %4871 = vst [vmem:[#allocation18_spill] sm:$0xff] %v3360_v35  ;;  %v3368_v22 = vadd.f32 %v1272_v13, %v3308_v38  ;;  %v1436_v32 = vmin.f32 %v1434_v39, %v3334_v48  ;;  %v1460_v8 = vmin.f32 %v1458_v56, %v3339_v3  ;;  %v4878_v13 = vld [vmem:[#allocation24_spill] sm:$0xff] }
 0x1f1   : > { %v1278_v12 = vpop.f32.mrb[38].mxu1  ;;  %4873 = vst [vmem:[#allocation30_spill] sm:$0xff] %v3365_v43  ;;  %4875 = vst [vmem:[#allocation46_spill] sm:$0xff] %v3377_v11  ;;  %v1431_v31 = vmin.f32 %v1429_v10, %v3344_v18  ;;  %v3387_v52 = vadd.f32 %v4878_v13, %v2838_v36  ;;  %v1403_v24 = vmin.f32 %v3348_v58, %v1402_v15  ;;  %v4885_v15 = vld [vmem:[#allocation27_spill] sm:$0xff] }
 0x1f2   : > { %v3329_v34 = vpop.f32.mrb[39].mxu1  ;;  %4877 = vst [vmem:[#allocation20_spill] sm:$0xff] %v3382_v14  ;;  %v3391_v39 = vadd.f32 %v1278_v12, %v3350_v2  ;;  %v1438_v49 = vmin.f32 %v1436_v32, %v3355_v17  ;;  %v3396_v56 = vadd.f32 %v4881_v62, %v2874_v54  ;;  %v1462_v25 = vmin.f32 %v1460_v8, %v3360_v35  ;;  %v3414_v62 = vpop.permute.xlu0 %519 }
 0x1f3   : > { %v3372_v44 = vpop.permute.xlu1 %514  ;;  %4879 = vst [vmem:[#allocation36_spill] sm:$0xff] %v3387_v52  ;;  %v3401_v10 = vadd.f32 %v4883_v19, %v3035_v6  ;;  %v1433_v36 = vmin.f32 %v1431_v31, %v3365_v43  ;;  %v3406_v13 = vadd.f32 %v4885_v15, %v2848_v41  ;;  %v1404_v12 = vmin.f32 %v3368_v22, %v1403_v24  ;;  %v4888_v6 = vld [vmem:[#allocation48_spill] sm:$0xff] }
 0x1f4   : > { %4880 = vst [vmem:[#allocation49_spill] sm:$0xff] %v3391_v39  ;;  %4882 = vst [vmem:[#allocation24_spill] sm:$0xff] %v3396_v56  ;;  %v1440_v8 = vmin.f32 %v1438_v49, %v3377_v11  ;;  %v3419_v19 = vadd.f32 %v4888_v6, %v2884_v59  ;;  %v1464_v31 = vmin.f32 %v1462_v25, %v3382_v14  ;;  %v4890_v41 = vld [vmem:[#allocation60_spill] sm:$0xff]  ;;  %v4918_v14 = vld [vmem:[#allocation66_spill] sm:$0xff] }
 0x1f5   : > { %v1284_v26 = vpop.f32.mrb[40].mxu1  ;;  %4884 = vst [vmem:[#allocation42_spill] sm:$0xff] %v3401_v10  ;;  %4886 = vst [vmem:[#allocation55_spill] sm:$0xff] %v3406_v13  ;;  %v3424_v15 = vadd.f32 %v4890_v41, %v3071_v50  ;;  %v1435_v24 = vmin.f32 %v1433_v36, %v3387_v52  ;;  %v1405_v17 = vmin.f32 %v3391_v39, %v1404_v12  ;;  %v4895_v50 = vld [vmem:[#allocation57_spill] sm:$0xff] }
 0x1f6   : > { %v3370_v29 = vpop.f32.mrb[41].mxu1  ;;  %v3410_v32 = vadd.f32 %v1284_v26, %v3372_v44  ;;  %4889 = vst [vmem:[#allocation48_spill] sm:$0xff] %v3419_v19  ;;  %v4892_v26 = vld [vmem:[#allocation33_spill] sm:$0xff]  ;;  %v1442_v59 = vmin.f32 %v1440_v8, %v3396_v56  ;;  %v1466_v25 = vmin.f32 %v1464_v31, %v3401_v10  ;;  %v3441_v6 = vadd.f32 %v4895_v50, %v2894_v0 }
 0x1f7   : > { %4891 = vst [vmem:[#allocation60_spill] sm:$0xff] %v3424_v15  ;;  %v3429_v35 = vadd.f32 %v4892_v26, %v2858_v46  ;;  %v3435_v11 = vpop.permute.xlu1 %524  ;;  %v3445_v36 = vadd.f32 %v3047_v45, %v3089_v27  ;;  %v1437_v12 = vmin.f32 %v1435_v24, %v3406_v13  ;;  %v3462_v45 = vadd.f32 %v3069_v20, %v4796_v61 }
 0x1f8   : > { %4887 = vst [vmem:[#allocation27_spill] sm:$0xff] %v3410_v32  ;;  %4896 = vst [vmem:[#allocation57_spill] sm:$0xff] %v3441_v6  ;;  %v1406_v26 = vmin.f32 %v3410_v32, %v1405_v17  ;;  %v1444_v0 = vmin.f32 %v1442_v59, %v3419_v19  ;;  %v1468_v50 = vmin.f32 %v1466_v25, %v3424_v15  ;;  %v4903_v17 = vld [vmem:[#allocation45_spill] sm:$0xff] }
 0x1f9   : > { %v1290_v3 = vpop.f32.mrb[42].mxu1  ;;  %4893 = vst [vmem:[#allocation33_spill] sm:$0xff] %v3429_v35  ;;  %4897 = vst [vmem:[#allocation104_spill] sm:$0xff] %v3445_v36  ;;  %v3466_v27 = vadd.f32 %v3082_v33, %v3124_v57  ;;  %v3471_v24 = vadd.f32 %v4903_v17, %v4799_v37  ;;  %v3480_v20 = vadd.f32 %v3117_v47, %v3142_v63  ;;  %v4906_v57 = vld [vmem:[#allocation32_spill] sm:$0xff]  ;;  %v4907_v33 = vld [vmem:[#allocation86_spill] sm:$0xff] }
 0x1fa   : > { %v3412_v54 = vpop.f32.mrb[43].mxu1  ;;  %v3433_v49 = vadd.f32 %v1290_v3, %v3414_v62  ;;  %v4898_v3 = vld [vmem:[#allocation39_spill] sm:$0xff]  ;;  %4901 = vst [vmem:[#allocation106_spill] sm:$0xff] %v3462_v45  ;;  %v1446_v59 = vmin.f32 %v1444_v0, %v3441_v6  ;;  %v1455_v25 = vmin.f32 %v3445_v36, %v1468_v50  ;;  %v3484_v61 = vadd.f32 %v4907_v33, %v4906_v57  ;;  %v4909_v17 = vld [vmem:[#allocation52_spill] sm:$0xff]  ;;  %v4912_v57 = vld [vmem:[#allocation89_spill] sm:$0xff] }
 0x1fb   : > { %v3450_v41 = vadd.f32 %v4898_v3, %v2868_v51  ;;  %4902 = vst [vmem:[#allocation107_spill] sm:$0xff] %v3466_v27  ;;  %v1439_v51 = vmin.f32 %v1437_v12, %v3429_v35  ;;  %4904 = vst [vmem:[#allocation45_spill] sm:$0xff] %v3471_v24  ;;  %v3474_v3 = vpop.permute.xlu0 %529  ;;  %v3501_v33 = vadd.f32 %v4912_v57, %v3185_v21  ;;  %v4915_v36 = vld [vmem:[#allocation96_spill] sm:$0xff]  ;;  %v4920_v21 = vld [vmem:[#allocation94_spill] sm:$0xff] }
 0x1fc   : > { %4894 = vst [vmem:[#allocation103_spill] sm:$0xff] %v3433_v49  ;;  %4905 = vst [vmem:[#allocation108_spill] sm:$0xff] %v3480_v20  ;;  %v1448_v47 = vmin.f32 %v1446_v59, %v3462_v45  ;;  %v1457_v63 = vmin.f32 %v1455_v25, %v3466_v27  ;;  %v3519_v57 = vadd.f32 %v4920_v21, %v3188_v4  ;;  %v4923_v27 = vld [vmem:[#allocation79_spill] sm:$0xff] }
 0x1fd   : > { %v1296_v46 = vpop.f32.mrb[44].mxu1  ;;  %4899 = vst [vmem:[#allocation39_spill] sm:$0xff] %v3450_v41  ;;  %4908 = vst [vmem:[#allocation32_spill] sm:$0xff] %v3484_v61  ;;  %v1441_v37 = vmin.f32 %v1439_v51, %v3450_v41  ;;  %v4914_v51 = vld [vmem:[#allocation38_spill] sm:$0xff] }
 0x1fe   : > { %v3454_v8 = vadd.f32 %v1296_v46, %v3435_v11  ;;  %v3456_v31 = vpop.f32.mrb[45].mxu1  ;;  %v1407_v46 = vmin.f32 %v3433_v49, %v1406_v26  ;;  %v3489_v26 = vadd.f32 %v4909_v17, %v4807_v60  ;;  %4913 = vst [vmem:[#allocation89_spill] sm:$0xff] %v3501_v33  ;;  %v3505_v10 = vadd.f32 %v4915_v36, %v4914_v51  ;;  %v4917_v17 = vld [vmem:[#allocation26_spill] sm:$0xff] }
 0x1ff   : > { %v1443_v60 = vmin.f32 %v1441_v37, %v3471_v24  ;;  %v3513_v6 = vadd.f32 %v4918_v14, %v4917_v17  ;;  %v1459_v59 = vmin.f32 %v1457_v63, %v3480_v20  ;;  %v1450_v25 = vmin.f32 %v1448_v47, %v3484_v61  ;;  %4921 = vst [vmem:[#allocation26_spill] sm:$0xff] %v3519_v57  ;;  %v3534_v4 = vpop.permute.xlu0 %539 }
 0x200   : > { %4900 = vst [vmem:[#allocation105_spill] sm:$0xff] %v3454_v8  ;;  %4910 = vst [vmem:[#allocation86_spill] sm:$0xff] %v3489_v26  ;;  %v1408_v15 = vmin.f32 %v3454_v8, %v1407_v46  ;;  %v3529_v14 = vadd.f32 %v4923_v27, %v4818_v55 }
 0x201   : > { %v1302_v12 = vpop.f32.mrb[46].mxu1  ;;  %4916 = vst [vmem:[#allocation38_spill] sm:$0xff] %v3505_v10  ;;  %4919 = vst [vmem:[#allocation96_spill] sm:$0xff] %v3513_v6  ;;  %v1461_v63 = vmin.f32 %v1459_v59, %v3501_v33  ;;  %v1452_v47 = vmin.f32 %v1450_v25, %v3505_v10 }
 0x202   : > { %v3493_v0 = vadd.f32 %v1302_v12, %v3474_v3  ;;  %v3495_v50 = vpop.f32.mrb[47].mxu1  ;;  %v3509_v12 = vpop.permute.xlu1 %534  ;;  %4924 = vst [vmem:[#allocation94_spill] sm:$0xff] %v3529_v14 }
 0x204   : > { %4911 = vst [vmem:[#allocation52_spill] sm:$0xff] %v3493_v0  ;;  %v1409_v46 = vmin.f32 %v3493_v0, %v1408_v15  ;;  %v1445_v15 = vmin.f32 %v1443_v60, %v3489_v26  ;;  %v1463_v60 = vmin.f32 %v1461_v63, %v3519_v57 }
 0x205   : > { %v1308_v36 = vpop.f32.mrb[48].mxu1 }
 0x206   : > { %v3522_v51 = vadd.f32 %v1308_v36, %v3509_v12  ;;  %v3524_v37 = vpop.f32.mrb[49].mxu1  ;;  %v1447_v21 = vmin.f32 %v1445_v15, %v3513_v6  ;;  %v4925_v36 = vld [vmem:[#allocation44_spill] sm:$0xff]  ;;  %v1465_v25 = vmin.f32 %v1463_v60, %v1452_v47  ;;  %v545_v33 = vpop.permute.xlu1 %544 }
 0x207   : > { %v3539_v20 = vadd.f32 %v4925_v36, %v4820_v9  ;;  %v4929_v36 = vld [vmem:[#allocation99_spill] sm:$0xff] }
 0x208   : > { %4922 = vst [vmem:[#allocation66_spill] sm:$0xff] %v3522_v51  ;;  %v1410_v17 = vmin.f32 %v3522_v51, %v1409_v46  ;;  %v1449_v59 = vmin.f32 %v1447_v21, %v3529_v14  ;;  %v3548_v46 = vadd.f32 %v3222_v16, %v4823_v23  ;;  %v3554_v63 = vadd.f32 %v4929_v36, %v3235_v7  ;;  %v550_v16 = vpop.permute.xlu0 %549  ;;  %v4933_v36 = vld [vmem:[#allocation100_spill] sm:$0xff] }
 0x209   : > { %4926 = vst [vmem:[#allocation79_spill] sm:$0xff] %v3539_v20  ;;  %v1314_v61 = vpop.f32.mrb[50].mxu1 }
 0x20a   : > { %v3543_v55 = vadd.f32 %v1314_v61, %v3534_v4  ;;  %v1316_v27 = vpop.f32.mrb[51].mxu1  ;;  %4928 = vst [vmem:[#allocation109_spill] sm:$0xff] %v3548_v46  ;;  %v1451_v9 = vmin.f32 %v1449_v59, %v3539_v20  ;;  %4930 = vst [vmem:[#allocation99_spill] sm:$0xff] %v3554_v63  ;;  %v1467_v21 = vmin.f32 %v1465_v25, %v3554_v63  ;;  %v555_v7 = vpop.permute.xlu1 %554 }
 0x20c   : > { %4927 = vst [vmem:[#allocation44_spill] sm:$0xff] %v3543_v55  ;;  %v1411_v15 = vmin.f32 %v3543_v55, %v1410_v17  ;;  %v1453_v47 = vmin.f32 %v1451_v9, %v3548_v46  ;;  %v560_v63 = vpop.permute.xlu0 %559 }
 0x20d   : > { %v1320_v57 = vpop.f32.mrb[52].mxu1 }
 0x20e   : > { %v3556_v61 = vadd.f32 %v1320_v57, %v545_v33  ;;  %v1322_v10 = vpop.f32.mrb[53].mxu1  ;;  %v1469_v59 = vmin.f32 %v1467_v21, %v1453_v47  ;;  %v3566_v57 = vadd.f32 %v4933_v36, %v3257_v42  ;;  %v4939_v36 = vld [vmem:[#allocation7_spill] sm:$0xff] }
 0x210   : > { %4931 = vst [vmem:[#allocation110_spill] sm:$0xff] %v3556_v61  ;;  %v1412_v23 = vmin.f32 %v3556_v61, %v1411_v15  ;;  %4934 = vst [vmem:[#allocation100_spill] sm:$0xff] %v3566_v57  ;;  %v1470_v9 = vmin.f32 %v3566_v57, %v1469_v59  ;;  %v565_v59 = vpop.permute.xlu1 %564 }
 0x211   : > { %v1326_v60 = vpop.f32.mrb[54].mxu1 }
 0x212   : > { %v3561_v17 = vadd.f32 %v1326_v60, %v550_v16  ;;  %v1328_v14 = vpop.f32.mrb[55].mxu1  ;;  %v4936_v60 = vld [vmem:[#allocation102_spill] sm:$0xff] }
 0x213   : > { %v3574_v46 = vadd.f32 %v4936_v60, %v3267_v1 }
 0x214   : > { %4932 = vst [vmem:[#allocation111_spill] sm:$0xff] %v3561_v17  ;;  %v1413_v20 = vmin.f32 %v3561_v17, %v1412_v23 }
 0x215   : > { %v1332_v45 = vpop.f32.mrb[56].mxu1  ;;  %4937 = vst [vmem:[#allocation102_spill] sm:$0xff] %v3574_v46  ;;  %v1471_v42 = vmin.f32 %v3574_v46, %v1470_v9  ;;  %v3593_v9 = vadd.f32 %v3329_v34, %v3350_v2  ;;  %v3599_v46 = vadd.f32 %v3370_v29, %v3372_v44  ;;  %v3617_v44 = vadd.f32 %v3495_v50, %v3474_v3 }
 0x216   : > { %v3568_v6 = vadd.f32 %v1332_v45, %v555_v7  ;;  %v1334_v25 = vpop.f32.mrb[57].mxu1  ;;  %v3581_v45 = vadd.f32 %v4939_v36, %v3288_v5  ;;  %v570_v36 = vpop.permute.xlu0 %569  ;;  %v3632_v50 = vadd.f32 %v1328_v14, %v550_v16 }
 0x217   : > { %4944 = vst [vmem:[#allocation115_spill] sm:$0xff] %v3593_v9  ;;  %4945 = vst [vmem:[#allocation116_spill] sm:$0xff] %v3599_v46 }
 0x218   : > { %4935 = vst [vmem:[#allocation112_spill] sm:$0xff] %v3568_v6  ;;  %v1414_v15 = vmin.f32 %v3568_v6, %v1413_v20  ;;  %4940 = vst [vmem:[#allocation7_spill] sm:$0xff] %v3581_v45  ;;  %v4941_v20 = vld [vmem:[#allocation34_spill] sm:$0xff] }
 0x219   : > { %v1338_v21 = vpop.f32.mrb[58].mxu1  ;;  %v3586_v57 = vadd.f32 %v4941_v20, %v3308_v38  ;;  %4949 = vst [vmem:[#allocation120_spill] sm:$0xff] %v3617_v44  ;;  %4953 = vst [vmem:[#allocation124_spill] sm:$0xff] %v3632_v50 }
 0x21a   : > { %v3576_v47 = vadd.f32 %v1338_v21, %v560_v63  ;;  %v1340_v23 = vpop.f32.mrb[59].mxu1  ;;  %v1472_v21 = vmin.f32 %v3581_v45, %v1471_v42  ;;  %v3606_v42 = vadd.f32 %v3412_v54, %v3414_v62  ;;  %v3622_v54 = vadd.f32 %v3524_v37, %v3509_v12 }
 0x21b   : > { %4942 = vst [vmem:[#allocation34_spill] sm:$0xff] %v3586_v57  ;;  %v3638_v37 = vadd.f32 %v1340_v23, %v560_v63 }
 0x21c   : > { %4938 = vst [vmem:[#allocation113_spill] sm:$0xff] %v3576_v47  ;;  %v1415_v26 = vmin.f32 %v3576_v47, %v1414_v15  ;;  %v1473_v15 = vmin.f32 %v3586_v57, %v1472_v21  ;;  %4947 = vst [vmem:[#allocation118_spill] sm:$0xff] %v3606_v42 }
 0x21d   : > { %v1344_v19 = vpop.f32.mrb[60].mxu1  ;;  %4950 = vst [vmem:[#allocation121_spill] sm:$0xff] %v3622_v54  ;;  %4955 = vst [vmem:[#allocation126_spill] sm:$0xff] %v3638_v37 }
 0x21e   : > { %v3588_v1 = vadd.f32 %v1344_v19, %v565_v59  ;;  %v1346_v60 = vpop.f32.mrb[61].mxu1  ;;  %v1474_v24 = vmin.f32 %v3593_v9, %v1473_v15 }
 0x220   : > { %4943 = vst [vmem:[#allocation114_spill] sm:$0xff] %v3588_v1  ;;  %v1416_v5 = vmin.f32 %v3588_v1, %v1415_v26  ;;  %v1475_v34 = vmin.f32 %v3599_v46, %v1474_v24  ;;  %v3612_v26 = vadd.f32 %v3456_v31, %v3435_v11  ;;  %v3626_v24 = vadd.f32 %v1316_v27, %v3534_v4 }
 0x221   : > { %v1350_v38 = vpop.f32.mrb[62].mxu1  ;;  %v4622_v27 = vlaneseq }
 0x222   : > { %v3601_v20 = vadd.f32 %v1350_v38, %v570_v36  ;;  %v1352_v19 = vpop.f32.mrb[63].mxu1  ;;  %4948 = vst [vmem:[#allocation119_spill] sm:$0xff] %v3612_v26  ;;  %v1476_v29 = vmin.f32 %v3606_v42, %v1475_v34  ;;  %4951 = vst [vmem:[#allocation122_spill] sm:$0xff] %v3626_v24 }
 0x223   : > { %v3644_v14 = vadd.f32 %v1352_v19, %v570_v36  ;;  %v3647_v16 = vshrl.u32 %v4622_v27, 7 }
 0x224   : > { %4946 = vst [vmem:[#allocation117_spill] sm:$0xff] %v3601_v20  ;;  %v1417_v2 = vmin.f32 %v3601_v20, %v1416_v5  ;;  %v1477_v15 = vmin.f32 %v3612_v26, %v1476_v29  ;;  %v3629_v5 = vadd.f32 %v1322_v10, %v545_v33  ;;  %v3635_v29 = vadd.f32 %v1334_v25, %v555_v7 }
 0x225   : > { %4957 = vst [vmem:[#allocation128_spill] sm:$0xff] %v3644_v14  ;;  %v3654_v23 = vadd.s32 8, %v3647_v16  ;;  %v3663_v36 = vadd.s32 32, %v3647_v16  ;;  %v3666_v19 = vadd.s32 40, %v3647_v16  ;;  %v3725_v27 = vadd.s32 136, %v3647_v16 }
 0x226   : > { %v1418_v21 = vrot.slane %v1417_v2, 4  ;;  %v1478_v62 = vmin.f32 %v3617_v44, %v1477_v15  ;;  %4952 = vst [vmem:[#allocation123_spill] sm:$0xff] %v3629_v5  ;;  %4954 = vst [vmem:[#allocation125_spill] sm:$0xff] %v3635_v29  ;;  %v3669_v15 = vadd.s32 48, %v3647_v16  ;;  %v3749_v44 = vadd.s32 168, %v3647_v16 }
 0x227   : > { %4958 = vst [vmem:[#allocation129_spill] sm:$0xff] %v3654_v23  ;;  %4961 = vst [vmem:[#allocation132_spill] sm:$0xff] %v3663_v36  ;;  %v3752_v26 = vadd.s32 296, %v3647_v16  ;;  %v3755_v42 = vadd.s32 176, %v3647_v16  ;;  %v3758_v46 = vadd.s32 304, %v3647_v16  ;;  %v3761_v9 = vadd.s32 184, %v3647_v16 }
 0x228   : > { %v1419_v11 = vmin.f32 %v1417_v2, %v1418_v21  ;;  %v1479_v31 = vmin.f32 %v3622_v54, %v1478_v62  ;;  %v3641_v21 = vadd.f32 %v1346_v60, %v565_v59  ;;  %v3657_v59 = vadd.s32 16, %v3647_v16 }
 0x229   : > { %v3660_v60 = vadd.s32 24, %v3647_v16  ;;  %v3672_v62 = vadd.s32 56, %v3647_v16  ;;  %v3764_v57 = vadd.s32 312, %v3647_v16  ;;  %v3773_v45 = vadd.s32 200, %v3647_v16 }
 0x22a   : > { %v1480_v3 = vmin.f32 %v3626_v24, %v1479_v31  ;;  %v1420_v38 = vrot.slane %v1419_v11, 2  ;;  %4956 = vst [vmem:[#allocation127_spill] sm:$0xff] %v3641_v21  ;;  %4959 = vst [vmem:[#allocation130_spill] sm:$0xff] %v3657_v59  ;;  %v3678_v31 = vadd.s32 72, %v3647_v16  ;;  %v3746_v24 = vadd.s32 288, %v3647_v16 }
 0x22b   : > { %4960 = vst [vmem:[#allocation131_spill] sm:$0xff] %v3660_v60  ;;  %v3776_v56 = vadd.s32 328, %v3647_v16  ;;  %v3779_v41 = vadd.s32 208, %v3647_v16  ;;  %v3782_v35 = vadd.s32 336, %v3647_v16  ;;  %v3785_v13 = vadd.s32 216, %v3647_v16 }
 0x22c   : > { %v1481_v34 = vmin.f32 %v3629_v5, %v1480_v3  ;;  %v1421_v4 = vmin.f32 %v1419_v11, %v1420_v38  ;;  %v3675_v11 = vadd.s32 64, %v3647_v16  ;;  %v3681_v3 = vadd.s32 80, %v3647_v16 }
 0x22d   : > { %v3743_v5 = vadd.s32 160, %v3647_v16  ;;  %v3788_v48 = vadd.s32 344, %v3647_v16  ;;  %v3791_v52 = vadd.s32 224, %v3647_v16  ;;  %v3794_v18 = vadd.s32 352, %v3647_v16 }
 0x22e   : > { %v1482_v12 = vmin.f32 %v3632_v50, %v1481_v34  ;;  %v1422_v33 = vrot.slane %v1421_v4, 1  ;;  %v3704_v34 = vadd.s32 88, %v3647_v16  ;;  %v3740_v50 = vadd.s32 280, %v3647_v16 }
 0x22f   : > { %4962 = vst [vmem:[#allocation133_spill] sm:$0xff] %v3794_v18  ;;  %v3797_v53 = vadd.s32 232, %v3647_v16  ;;  %v3800_v28 = vadd.s32 360, %v3647_v16  ;;  %v3803_v20 = vadd.s32 240, %v3647_v16  ;;  %v3806_v1 = vadd.s32 368, %v3647_v16 }
 0x230   : > { %v1483_v2 = vmin.f32 %v3635_v29, %v1482_v12  ;;  %v3650_v25 = vmin.f32 %v1421_v4, %v1422_v33  ;;  %v3707_v12 = vadd.s32 96, %v3647_v16  ;;  %v3710_v4 = vadd.s32 104, %v3647_v16 }
 0x231   : > { %v3719_v33 = vadd.s32 128, %v3647_v16  ;;  %v3737_v29 = vadd.s32 152, %v3647_v16  ;;  %4963 = vst [vmem:[#allocation134_spill] sm:$0xff] %v3800_v28  ;;  %4964 = vst [vmem:[#allocation135_spill] sm:$0xff] %v3806_v1  ;;  %v3809_v47 = vadd.s32 248, %v3647_v16  ;;  %v3812_v6 = vadd.s32 376, %v3647_v16 }
 0x232   : > { %v1484_v10 = vmin.f32 %v3638_v37, %v1483_v2  ;;  %vm1666_vm2 = vcmp.eq.f32.partialorder %v3454_v8, %v3650_v25  ;;  %vm1668_vm3 = vcmp.eq.f32.partialorder %v3493_v0, %v3650_v25  ;;  %vm1670_vm4 = vcmp.eq.f32.partialorder %v3522_v51, %v3650_v25  ;;  %v4969_v51 = vld [vmem:[#allocation50_spill] sm:$0xff]  ;;  %v4970_v0 = vld [vmem:[#allocation61_spill] sm:$0xff] }
 0x233   : > { %vm1672_vm5 = vcmp.eq.f32.partialorder %v3543_v55, %v3650_v25  ;;  %vm1674_vm6 = vcmp.eq.f32.partialorder %v3556_v61, %v3650_v25  ;;  %vm1676_vm7 = vcmp.eq.f32.partialorder %v3561_v17, %v3650_v25  ;;  %v3713_v2 = vadd.s32 112, %v3647_v16  ;;  %4965 = vst [vmem:[#allocation136_spill] sm:$0xff] %v3812_v6  ;;  %v4967_v61 = vld [vmem:[#allocation53_spill] sm:$0xff] }
 0x234   : > { %v1485_v7 = vmin.f32 %v3641_v21, %v1484_v10  ;;  %v3716_v10 = vadd.s32 120, %v3647_v16  ;;  %v3731_v21 = vadd.s32 144, %v3647_v16  ;;  %v3734_v37 = vadd.s32 272, %v3647_v16  ;;  %v4968_v55 = vld [vmem:[#allocation9_spill] sm:$0xff] }
 0x235   : > { %v3815_v17 = vadd.s32 384, %v3647_v16  ;;  %vm1558_vm12 = vcmp.eq.f32.partialorder %v4967_v61, %v3650_v25  ;;  %vm1560_vm13 = vcmp.eq.f32.partialorder %v4968_v55, %v3650_v25  ;;  %vm1562_vm14 = vcmp.eq.f32.partialorder %v4969_v51, %v3650_v25 }
 0x236   : > { %v1486_v63 = vmin.f32 %v3644_v14, %v1485_v7  ;;  %v3722_v7 = vadd.s32 256, %v3647_v16  ;;  %v3728_v14 = vadd.s32 264, %v3647_v16  ;;  %vm1564_vm15 = vcmp.eq.f32.partialorder %v4970_v0, %v3650_v25 }
 0x237   : > { %4966 = vst [vmem:[#allocation137_spill] sm:$0xff] %v3815_v17  ;;  %v3826_v8 = vadd.s32 392, %v3647_v16  ;;  %v3829_v49 = vadd.s32 400, %v3647_v16  ;;  %v3832_v32 = vadd.s32 408, %v3647_v16  ;;  %v3837_v61 = vadd.s32 416, %v3647_v16 }
 0x238   : > { %v1487_v38 = vrot.slane %v1486_v63, 4  ;;  %v3840_v55 = vadd.s32 424, %v3647_v16  ;;  %v3843_v51 = vadd.s32 432, %v3647_v16  ;;  %v3846_v0 = vadd.s32 440, %v3647_v16 }
 0x239   : > { %4971 = vst [vmem:[#allocation53_spill] sm:$0xff] %v3826_v8  ;;  %4972 = vst [vmem:[#allocation9_spill] sm:$0xff] %v3829_v49  ;;  %v1686_v8 = vsel %vm1558_vm12, %v3647_v16, 512  ;;  %v1688_v49 = vsel %vm1560_vm13, %v3654_v23, 512  ;;  %v3866_v23 = vadd.s32 472, %v3647_v16 }
 0x23a   : > { %v1488_v54 = vmin.f32 %v1486_v63, %v1487_v38  ;;  %v3767_v63 = vadd.s32 192, %v3647_v16  ;;  %v3770_v38 = vadd.s32 320, %v3647_v16  ;;  %4973 = vst [vmem:[#allocation50_spill] sm:$0xff] %v3832_v32  ;;  %4975 = vst [vmem:[#allocation138_spill] sm:$0xff] %v3837_v61  ;;  %v1690_v32 = vsel %vm1562_vm14, %v3657_v59, 512 }
 0x23b   : > { %4976 = vst [vmem:[#allocation139_spill] sm:$0xff] %v3840_v55  ;;  %4977 = vst [vmem:[#allocation140_spill] sm:$0xff] %v3843_v51  ;;  %v3856_v61 = vadd.s32 456, %v3647_v16  ;;  %v4981_v55 = vld [vmem:[#allocation54_spill] sm:$0xff]  ;;  %v4982_v51 = vld [vmem:[#allocation65_spill] sm:$0xff]  ;;  %vm1814_vm14 = vcmp.lt.s32.totalorder %v1686_v8, %v1690_v32 }
 0x23c   : > { %v1489_v43 = vrot.slane %v1488_v54, 2  ;;  %4978 = vst [vmem:[#allocation141_spill] sm:$0xff] %v3846_v0  ;;  %vm1566_vm0 = vcmp.eq.f32.partialorder %v4981_v55, %v3650_v25  ;;  %vm1568_vm1 = vcmp.eq.f32.partialorder %v4982_v51, %v3650_v25  ;;  %v3863_v0 = vadd.s32 464, %v3647_v16  ;;  %4984 = vst [vmem:[#allocation65_spill] sm:$0xff] %v3866_v23  ;;  %v4988_v23 = vld [vmem:[#allocation58_spill] sm:$0xff] }
 0x23d   : > { %4980 = vst [vmem:[#allocation143_spill] sm:$0xff] %v3856_v61  ;;  %v4987_v61 = vld [vmem:[#allocation69_spill] sm:$0xff]  ;;  %v1694_v55 = vsel %vm1566_vm0, %v3663_v36, 512  ;;  %v1696_v51 = vsel %vm1568_vm1, %v3666_v19, 512  ;;  %vm1574_vm11 = vcmp.eq.f32.partialorder %v4988_v23, %v3650_v25  ;;  %v4990_v36 = vld [vmem:[#allocation62_spill] sm:$0xff] }
 0x23e   : > { %v3834_v17 = vmin.f32 %v1488_v54, %v1489_v43  ;;  %v1692_v43 = vsel %vm1564_vm15, %v3660_v60, 512  ;;  %v3853_v54 = vadd.s32 448, %v3647_v16  ;;  %4983 = vst [vmem:[#allocation54_spill] sm:$0xff] %v3863_v0  ;;  %v3869_v60 = vadd.s32 480, %v3647_v16 }
 0x23f   : > { %vm1572_vm13 = vcmp.eq.f32.partialorder %v4987_v61, %v3650_v25  ;;  %vm1816_vm15 = vcmp.lt.s32.totalorder %v1688_v49, %v1692_v43  ;;  %v1815_v0 = vsel %vm1814_vm14, %v1686_v8, %v1690_v32  ;;  %vm1578_vm0 = vcmp.eq.f32.partialorder %v4990_v36, %v3650_v25  ;;  %v4991_v32 = vld [vmem:[#allocation75_spill] sm:$0xff] }
 0x240   : > { %4974 = vst [vmem:[#allocation61_spill] sm:$0xff] %v3834_v17  ;;  %4979 = vst [vmem:[#allocation142_spill] sm:$0xff] %v3853_v54  ;;  %v4986_v54 = vld [vmem:[#allocation56_spill] sm:$0xff]  ;;  %v1817_v39 = vsel %vm1816_vm15, %v1688_v49, %v1692_v43  ;;  %vm1818_vm9 = vcmp.lt.s32.totalorder %v1815_v0, %v1694_v55  ;;  %v1700_v61 = vsel %vm1572_vm13, %v3672_v62, 512  ;;  %vm1580_vm1 = vcmp.eq.f32.partialorder %v4991_v32, %v3650_v25  ;;  %v4992_v43 = vld [vmem:[#allocation67_spill] sm:$0xff] }
 0x241   : > { %4985 = vst [vmem:[#allocation144_spill] sm:$0xff] %v3869_v60  ;;  %vm1570_vm12 = vcmp.eq.f32.partialorder %v4986_v54, %v3650_v25  ;;  %v4989_v60 = vld [vmem:[#allocation72_spill] sm:$0xff]  ;;  %vm1820_vm8 = vcmp.lt.s32.totalorder %v1817_v39, %v1696_v51  ;;  %v1819_v59 = vsel %vm1818_vm9, %v1815_v0, %v1694_v55  ;;  %v1702_v49 = vsel %vm1574_vm11, %v3675_v11, 512  ;;  %v4993_v0 = vld [vmem:[#allocation78_spill] sm:$0xff] }
 0x242   : > { %vm1576_vm10 = vcmp.eq.f32.partialorder %v4989_v60, %v3650_v25  ;;  %v1698_v54 = vsel %vm1570_vm12, %v3669_v15, 512  ;;  %v1821_v17 = vsel %vm1820_vm8, %v1817_v39, %v1696_v51  ;;  %vm1582_vm12 = vcmp.eq.f32.partialorder %v4992_v43, %v3650_v25  ;;  %v4994_v32 = vld [vmem:[#allocation70_spill] sm:$0xff] }
 0x243   : > { %vm1822_vm14 = vcmp.lt.s32.totalorder %v1819_v59, %v1698_v54  ;;  %vm1824_vm15 = vcmp.lt.s32.totalorder %v1821_v17, %v1700_v61  ;;  %v1704_v8 = vsel %vm1576_vm10, %v3678_v31, 512  ;;  %vm1584_vm8 = vcmp.eq.f32.partialorder %v4993_v0, %v3650_v25  ;;  %v4996_v0 = vld [vmem:[#allocation73_spill] sm:$0xff] }
 0x244   : > { %v1823_v23 = vsel %vm1822_vm14, %v1819_v59, %v1698_v54  ;;  %v1825_v60 = vsel %vm1824_vm15, %v1821_v17, %v1700_v61  ;;  %v1706_v39 = vsel %vm1578_vm0, %v3681_v3, 512  ;;  %v1708_v36 = vsel %vm1580_vm1, %v3704_v34, 512  ;;  %v4995_v59 = vld [vmem:[#allocation82_spill] sm:$0xff] }
 0x245   : > { %vm1826_vm9 = vcmp.lt.s32.totalorder %v1823_v23, %v1702_v49  ;;  %vm1828_vm13 = vcmp.lt.s32.totalorder %v1825_v60, %v1704_v8  ;;  %vm1586_vm11 = vcmp.eq.f32.partialorder %v4994_v32, %v3650_v25  ;;  %vm1588_vm10 = vcmp.eq.f32.partialorder %v4995_v59, %v3650_v25  ;;  %v4998_v59 = vld [vmem:[#allocation76_spill] sm:$0xff] }
 0x246   : > { %v1827_v55 = vsel %vm1826_vm9, %v1823_v23, %v1702_v49  ;;  %v1829_v51 = vsel %vm1828_vm13, %v1825_v60, %v1704_v8  ;;  %v1710_v17 = vsel %vm1582_vm12, %v3707_v12, 512  ;;  %v1712_v54 = vsel %vm1584_vm8, %v3710_v4, 512  ;;  %v4997_v49 = vld [vmem:[#allocation85_spill] sm:$0xff] }
 0x247   : > { %vm1830_vm14 = vcmp.lt.s32.totalorder %v1827_v55, %v1706_v39  ;;  %vm1832_vm15 = vcmp.lt.s32.totalorder %v1829_v51, %v1708_v36  ;;  %vm1590_vm0 = vcmp.eq.f32.partialorder %v4996_v0, %v3650_v25  ;;  %vm1592_vm1 = vcmp.eq.f32.partialorder %v4997_v49, %v3650_v25  ;;  %v5000_v49 = vld [vmem:[#allocation80_spill] sm:$0xff] }
 0x248   : > { %v1831_v61 = vsel %vm1830_vm14, %v1827_v55, %v1706_v39  ;;  %v1833_v43 = vsel %vm1832_vm15, %v1829_v51, %v1708_v36  ;;  %v1714_v8 = vsel %vm1586_vm11, %v3713_v2, 512  ;;  %v1716_v23 = vsel %vm1588_vm10, %v3716_v10, 512  ;;  %v4999_v39 = vld [vmem:[#allocation90_spill] sm:$0xff] }
 0x249   : > { %vm1834_vm9 = vcmp.lt.s32.totalorder %v1831_v61, %v1710_v17  ;;  %vm1836_vm13 = vcmp.lt.s32.totalorder %v1833_v43, %v1712_v54  ;;  %vm1594_vm12 = vcmp.eq.f32.partialorder %v4998_v59, %v3650_v25  ;;  %vm1596_vm8 = vcmp.eq.f32.partialorder %v4999_v39, %v3650_v25  ;;  %v5002_v39 = vld [vmem:[#allocation83_spill] sm:$0xff] }
 0x24a   : > { %v1835_v60 = vsel %vm1834_vm9, %v1831_v61, %v1710_v17  ;;  %v1837_v32 = vsel %vm1836_vm13, %v1833_v43, %v1712_v54  ;;  %v1718_v36 = vsel %vm1590_vm0, %v3719_v33, 512  ;;  %v1720_v55 = vsel %vm1592_vm1, %v3725_v27, 512  ;;  %v5001_v17 = vld [vmem:[#allocation21_spill] sm:$0xff] }
 0x24b   : > { %vm1838_vm14 = vcmp.lt.s32.totalorder %v1835_v60, %v1714_v8  ;;  %vm1840_vm15 = vcmp.lt.s32.totalorder %v1837_v32, %v1716_v23  ;;  %vm1598_vm11 = vcmp.eq.f32.partialorder %v5000_v49, %v3650_v25  ;;  %vm1600_vm10 = vcmp.eq.f32.partialorder %v5001_v17, %v3650_v25  ;;  %v5004_v17 = vld [vmem:[#allocation87_spill] sm:$0xff] }
 0x24c   : > { %v1839_v51 = vsel %vm1838_vm14, %v1835_v60, %v1714_v8  ;;  %v1841_v0 = vsel %vm1840_vm15, %v1837_v32, %v1716_v23  ;;  %v1722_v54 = vsel %vm1594_vm12, %v3731_v21, 512  ;;  %v1724_v61 = vsel %vm1596_vm8, %v3737_v29, 512  ;;  %v5003_v8 = vld [vmem:[#allocation23_spill] sm:$0xff] }
 0x24d   : > { %vm1842_vm9 = vcmp.lt.s32.totalorder %v1839_v51, %v1718_v36  ;;  %vm1844_vm13 = vcmp.lt.s32.totalorder %v1841_v0, %v1720_v55  ;;  %vm1602_vm0 = vcmp.eq.f32.partialorder %v5002_v39, %v3650_v25  ;;  %vm1604_vm1 = vcmp.eq.f32.partialorder %v5003_v8, %v3650_v25  ;;  %v5006_v8 = vld [vmem:[#allocation28_spill] sm:$0xff] }
 0x24e   : > { %v1843_v43 = vsel %vm1842_vm9, %v1839_v51, %v1718_v36  ;;  %v1845_v59 = vsel %vm1844_vm13, %v1841_v0, %v1720_v55  ;;  %v1726_v23 = vsel %vm1598_vm11, %v3743_v5, 512  ;;  %v1728_v60 = vsel %vm1600_vm10, %v3749_v44, 512  ;;  %v5005_v36 = vld [vmem:[#allocation97_spill] sm:$0xff] }
 0x24f   : > { %vm1846_vm14 = vcmp.lt.s32.totalorder %v1843_v43, %v1722_v54  ;;  %vm1848_vm15 = vcmp.lt.s32.totalorder %v1845_v59, %v1724_v61  ;;  %vm1606_vm12 = vcmp.eq.f32.partialorder %v5004_v17, %v3650_v25  ;;  %vm1608_vm8 = vcmp.eq.f32.partialorder %v5005_v36, %v3650_v25  ;;  %v5008_v36 = vld [vmem:[#allocation93_spill] sm:$0xff] }
 0x250   : > { %v1847_v32 = vsel %vm1846_vm14, %v1843_v43, %v1722_v54  ;;  %v1849_v49 = vsel %vm1848_vm15, %v1845_v59, %v1724_v61  ;;  %v1730_v55 = vsel %vm1602_vm0, %v3755_v42, 512  ;;  %v1732_v51 = vsel %vm1604_vm1, %v3761_v9, 512  ;;  %v5007_v54 = vld [vmem:[#allocation29_spill] sm:$0xff] }
 0x251   : > { %vm1850_vm9 = vcmp.lt.s32.totalorder %v1847_v32, %v1726_v23  ;;  %vm1852_vm13 = vcmp.lt.s32.totalorder %v1849_v49, %v1728_v60  ;;  %vm1610_vm11 = vcmp.eq.f32.partialorder %v5006_v8, %v3650_v25  ;;  %vm1612_vm10 = vcmp.eq.f32.partialorder %v5007_v54, %v3650_v25  ;;  %v5010_v54 = vld [vmem:[#allocation95_spill] sm:$0xff] }
 0x252   : > { %v1851_v0 = vsel %vm1850_vm9, %v1847_v32, %v1726_v23  ;;  %v1853_v39 = vsel %vm1852_vm13, %v1849_v49, %v1728_v60  ;;  %v1734_v61 = vsel %vm1606_vm12, %v3767_v63, 512  ;;  %v1736_v43 = vsel %vm1608_vm8, %v3773_v45, 512  ;;  %v5009_v23 = vld [vmem:[#allocation35_spill] sm:$0xff] }
 0x253   : > { %vm1854_vm14 = vcmp.lt.s32.totalorder %v1851_v0, %v1730_v55  ;;  %vm1856_vm15 = vcmp.lt.s32.totalorder %v1853_v39, %v1732_v51  ;;  %vm1614_vm0 = vcmp.eq.f32.partialorder %v5008_v36, %v3650_v25  ;;  %vm1616_vm1 = vcmp.eq.f32.partialorder %v5009_v23, %v3650_v25  ;;  %v5012_v23 = vld [vmem:[#allocation63_spill] sm:$0xff] }
 0x254   : > { %v1855_v59 = vsel %vm1854_vm14, %v1851_v0, %v1730_v55  ;;  %v1857_v17 = vsel %vm1856_vm15, %v1853_v39, %v1732_v51  ;;  %v1738_v60 = vsel %vm1610_vm11, %v3779_v41, 512  ;;  %v1740_v32 = vsel %vm1612_vm10, %v3785_v13, 512  ;;  %v5011_v55 = vld [vmem:[#allocation40_spill] sm:$0xff] }
 0x255   : > { %vm1858_vm9 = vcmp.lt.s32.totalorder %v1855_v59, %v1734_v61  ;;  %vm1860_vm13 = vcmp.lt.s32.totalorder %v1857_v17, %v1736_v43  ;;  %vm1618_vm12 = vcmp.eq.f32.partialorder %v5010_v54, %v3650_v25  ;;  %vm1620_vm8 = vcmp.eq.f32.partialorder %v5011_v55, %v3650_v25  ;;  %v5014_v55 = vld [vmem:[#allocation64_spill] sm:$0xff] }
 0x256   : > { %v1859_v49 = vsel %vm1858_vm9, %v1855_v59, %v1734_v61  ;;  %v1861_v8 = vsel %vm1860_vm13, %v1857_v17, %v1736_v43  ;;  %v1742_v51 = vsel %vm1614_vm0, %v3791_v52, 512  ;;  %v1744_v0 = vsel %vm1616_vm1, %v3797_v53, 512  ;;  %v5013_v61 = vld [vmem:[#allocation59_spill] sm:$0xff] }
 0x257   : > { %vm1862_vm14 = vcmp.lt.s32.totalorder %v1859_v49, %v1738_v60  ;;  %vm1864_vm15 = vcmp.lt.s32.totalorder %v1861_v8, %v1740_v32  ;;  %vm1622_vm11 = vcmp.eq.f32.partialorder %v5012_v23, %v3650_v25  ;;  %vm1624_vm10 = vcmp.eq.f32.partialorder %v5013_v61, %v3650_v25  ;;  %v5016_v61 = vld [vmem:[#allocation71_spill] sm:$0xff] }
 0x258   : > { %v1863_v39 = vsel %vm1862_vm14, %v1859_v49, %v1738_v60  ;;  %v1865_v36 = vsel %vm1864_vm15, %v1861_v8, %v1740_v32  ;;  %v1746_v43 = vsel %vm1618_vm12, %v3803_v20, 512  ;;  %v1748_v59 = vsel %vm1620_vm8, %v3809_v47, 512  ;;  %v5015_v60 = vld [vmem:[#allocation68_spill] sm:$0xff] }
 0x259   : > { %vm1866_vm9 = vcmp.lt.s32.totalorder %v1863_v39, %v1742_v51  ;;  %vm1868_vm13 = vcmp.lt.s32.totalorder %v1865_v36, %v1744_v0  ;;  %vm1626_vm0 = vcmp.eq.f32.partialorder %v5014_v55, %v3650_v25  ;;  %vm1628_vm1 = vcmp.eq.f32.partialorder %v5015_v60, %v3650_v25  ;;  %v5018_v60 = vld [vmem:[#allocation77_spill] sm:$0xff] }
 0x25a   : > { %v1867_v17 = vsel %vm1866_vm9, %v1863_v39, %v1742_v51  ;;  %v1869_v54 = vsel %vm1868_vm13, %v1865_v36, %v1744_v0  ;;  %v1750_v32 = vsel %vm1622_vm11, %v3722_v7, 512  ;;  %v1752_v49 = vsel %vm1624_vm10, %v3728_v14, 512  ;;  %v5017_v51 = vld [vmem:[#allocation74_spill] sm:$0xff] }
 0x25b   : > { %vm1870_vm14 = vcmp.lt.s32.totalorder %v1867_v17, %v1746_v43  ;;  %vm1872_vm15 = vcmp.lt.s32.totalorder %v1869_v54, %v1748_v59  ;;  %vm1630_vm12 = vcmp.eq.f32.partialorder %v5016_v61, %v3650_v25  ;;  %vm1632_vm8 = vcmp.eq.f32.partialorder %v5017_v51, %v3650_v25  ;;  %v5020_v51 = vld [vmem:[#allocation84_spill] sm:$0xff] }
 0x25c   : > { %v1871_v8 = vsel %vm1870_vm14, %v1867_v17, %v1746_v43  ;;  %v1873_v23 = vsel %vm1872_vm15, %v1869_v54, %v1748_v59  ;;  %v1754_v0 = vsel %vm1626_vm0, %v3734_v37, 512  ;;  %v1756_v39 = vsel %vm1628_vm1, %v3740_v50, 512  ;;  %v5019_v43 = vld [vmem:[#allocation81_spill] sm:$0xff] }
 0x25d   : > { %vm1874_vm9 = vcmp.lt.s32.totalorder %v1871_v8, %v1750_v32  ;;  %vm1876_vm13 = vcmp.lt.s32.totalorder %v1873_v23, %v1752_v49  ;;  %vm1634_vm11 = vcmp.eq.f32.partialorder %v5018_v60, %v3650_v25  ;;  %vm1636_vm10 = vcmp.eq.f32.partialorder %v5019_v43, %v3650_v25  ;;  %v5022_v43 = vld [vmem:[#allocation91_spill] sm:$0xff] }
 0x25e   : > { %v1875_v36 = vsel %vm1874_vm9, %v1871_v8, %v1750_v32  ;;  %v1877_v55 = vsel %vm1876_vm13, %v1873_v23, %v1752_v49  ;;  %v1758_v59 = vsel %vm1630_vm12, %v3746_v24, 512  ;;  %v1760_v17 = vsel %vm1632_vm8, %v3752_v26, 512  ;;  %v5021_v32 = vld [vmem:[#allocation88_spill] sm:$0xff] }
 0x25f   : > { %vm1878_vm14 = vcmp.lt.s32.totalorder %v1875_v36, %v1754_v0  ;;  %vm1880_vm15 = vcmp.lt.s32.totalorder %v1877_v55, %v1756_v39  ;;  %vm1638_vm0 = vcmp.eq.f32.partialorder %v5020_v51, %v3650_v25  ;;  %vm1640_vm1 = vcmp.eq.f32.partialorder %v5021_v32, %v3650_v25  ;;  %v5024_v32 = vld [vmem:[#allocation51_spill] sm:$0xff] }
 0x260   : > { %v1879_v54 = vsel %vm1878_vm14, %v1875_v36, %v1754_v0  ;;  %v1881_v61 = vsel %vm1880_vm15, %v1877_v55, %v1756_v39  ;;  %v1762_v49 = vsel %vm1634_vm11, %v3758_v46, 512  ;;  %v1764_v8 = vsel %vm1636_vm10, %v3764_v57, 512  ;;  %v5023_v0 = vld [vmem:[#allocation92_spill] sm:$0xff] }
 0x261   : > { %vm1882_vm9 = vcmp.lt.s32.totalorder %v1879_v54, %v1758_v59  ;;  %vm1884_vm13 = vcmp.lt.s32.totalorder %v1881_v61, %v1760_v17  ;;  %vm1642_vm12 = vcmp.eq.f32.partialorder %v5022_v43, %v3650_v25  ;;  %vm1644_vm8 = vcmp.eq.f32.partialorder %v5023_v0, %v3650_v25  ;;  %v5026_v0 = vld [vmem:[#allocation101_spill] sm:$0xff] }
 0x262   : > { %v1883_v23 = vsel %vm1882_vm9, %v1879_v54, %v1758_v59  ;;  %v1885_v60 = vsel %vm1884_vm13, %v1881_v61, %v1760_v17  ;;  %v1766_v39 = vsel %vm1638_vm0, %v3770_v38, 512  ;;  %v1768_v36 = vsel %vm1640_vm1, %v3776_v56, 512  ;;  %v5025_v59 = vld [vmem:[#allocation98_spill] sm:$0xff] }
 0x263   : > { %vm1886_vm14 = vcmp.lt.s32.totalorder %v1883_v23, %v1762_v49  ;;  %vm1888_vm15 = vcmp.lt.s32.totalorder %v1885_v60, %v1764_v8  ;;  %vm1646_vm11 = vcmp.eq.f32.partialorder %v5024_v32, %v3650_v25  ;;  %vm1648_vm10 = vcmp.eq.f32.partialorder %v5025_v59, %v3650_v25  ;;  %v5029_v59 = vld [vmem:[#allocation53_spill] sm:$0xff] }
 0x264   : > { %v1887_v55 = vsel %vm1886_vm14, %v1883_v23, %v1762_v49  ;;  %v1889_v51 = vsel %vm1888_vm15, %v1885_v60, %v1764_v8  ;;  %v1770_v17 = vsel %vm1642_vm12, %v3782_v35, 512  ;;  %v1772_v54 = vsel %vm1644_vm8, %v3788_v48, 512 }
 0x265   : > { %vm1890_vm9 = vcmp.lt.s32.totalorder %v1887_v55, %v1766_v39  ;;  %vm1892_vm13 = vcmp.lt.s32.totalorder %v1889_v51, %v1768_v36  ;;  %vm1650_vm0 = vcmp.eq.f32.partialorder %v5026_v0, %v3650_v25  ;;  %vm1652_vm1 = vcmp.eq.f32.partialorder %v3283_v30, %v3650_v25 }
 0x266   : > { %v1891_v61 = vsel %vm1890_vm9, %v1887_v55, %v1766_v39  ;;  %v1893_v43 = vsel %vm1892_vm13, %v1889_v51, %v1768_v36  ;;  %v1774_v49 = vsel %vm1646_vm11, %v3794_v18, 512  ;;  %v1776_v8 = vsel %vm1648_vm10, %v3800_v28, 512  ;;  %v5027_v51 = vld [vmem:[#allocation49_spill] sm:$0xff]  ;;  %v5047_v28 = vld [vmem:[#allocation143_spill] sm:$0xff] }
 0x267   : > { %vm1894_vm14 = vcmp.lt.s32.totalorder %v1891_v61, %v1770_v17  ;;  %vm1896_vm15 = vcmp.lt.s32.totalorder %v1893_v43, %v1772_v54  ;;  %vm1654_vm12 = vcmp.eq.f32.partialorder %v3327_v40, %v3650_v25  ;;  %vm1656_vm8 = vcmp.eq.f32.partialorder %v3348_v58, %v3650_v25  ;;  %v5028_v40 = vld [vmem:[#allocation137_spill] sm:$0xff] }
 0x268   : > { %v1895_v23 = vsel %vm1894_vm14, %v1891_v61, %v1770_v17  ;;  %v1897_v60 = vsel %vm1896_vm15, %v1893_v43, %v1772_v54  ;;  %v1778_v39 = vsel %vm1650_vm0, %v3806_v1, 512  ;;  %v1780_v30 = vsel %vm1652_vm1, %v3812_v6, 512  ;;  %v5030_v61 = vld [vmem:[#allocation27_spill] sm:$0xff] }
 0x269   : > { %vm1898_vm9 = vcmp.lt.s32.totalorder %v1895_v23, %v1774_v49  ;;  %vm1900_vm13 = vcmp.lt.s32.totalorder %v1897_v60, %v1776_v8  ;;  %vm1658_vm11 = vcmp.eq.f32.partialorder %v3368_v22, %v3650_v25  ;;  %vm1660_vm10 = vcmp.eq.f32.partialorder %v5027_v51, %v3650_v25  ;;  %v5031_v43 = vld [vmem:[#allocation103_spill] sm:$0xff]  ;;  %v5032_v22 = vld [vmem:[#allocation9_spill] sm:$0xff] }
 0x26a   : > { %v1899_v36 = vsel %vm1898_vm9, %v1895_v23, %v1774_v49  ;;  %v1901_v55 = vsel %vm1900_vm13, %v1897_v60, %v1776_v8  ;;  %v1782_v32 = vsel %vm1654_vm12, %v5028_v40, 512  ;;  %v1784_v58 = vsel %vm1656_vm8, %v5029_v59, 512  ;;  %v5033_v49 = vld [vmem:[#allocation50_spill] sm:$0xff] }
 0x26b   : > { %vm1902_vm14 = vcmp.lt.s32.totalorder %v1899_v36, %v1778_v39  ;;  %vm1904_vm15 = vcmp.lt.s32.totalorder %v1901_v55, %v1780_v30  ;;  %vm1662_vm0 = vcmp.eq.f32.partialorder %v5030_v61, %v3650_v25  ;;  %vm1664_vm1 = vcmp.eq.f32.partialorder %v5031_v43, %v3650_v25 }
 0x26c   : > { %v1903_v17 = vsel %vm1902_vm14, %v1899_v36, %v1778_v39  ;;  %v1905_v54 = vsel %vm1904_vm15, %v1901_v55, %v1780_v30  ;;  %v1786_v0 = vsel %vm1658_vm11, %v5032_v22, 512  ;;  %v1788_v8 = vsel %vm1660_vm10, %v5033_v49, 512  ;;  %v5036_v30 = vld [vmem:[#allocation138_spill] sm:$0xff]  ;;  %v5037_v55 = vld [vmem:[#allocation139_spill] sm:$0xff] }
 0x26d   : > { %vm1906_vm9 = vcmp.lt.s32.totalorder %v1903_v17, %v1782_v32  ;;  %vm1908_vm13 = vcmp.lt.s32.totalorder %v1905_v54, %v1784_v58  ;;  %v4017_v51 = vadd.s32 488, %v3647_v16  ;;  %v4020_v39 = vadd.s32 496, %v3647_v16  ;;  %v5049_v49 = vld [vmem:[#allocation54_spill] sm:$0xff] }
 0x26e   : > { %v1907_v23 = vsel %vm1906_vm9, %v1903_v17, %v1782_v32  ;;  %v1909_v60 = vsel %vm1908_vm13, %v1905_v54, %v1784_v58  ;;  %v1790_v36 = vsel %vm1662_vm0, %v5036_v30, 512  ;;  %v1792_v61 = vsel %vm1664_vm1, %v5037_v55, 512  ;;  %v5039_v32 = vld [vmem:[#allocation61_spill] sm:$0xff]  ;;  %v5041_v54 = vld [vmem:[#allocation140_spill] sm:$0xff] }
 0x26f   : > { %5034 = vst [vmem:[#allocation56_spill] sm:$0xff] %v4017_v51  ;;  %5035 = vst [vmem:[#allocation69_spill] sm:$0xff] %v4020_v39  ;;  %vm1910_vm12 = vcmp.lt.s32.totalorder %v1907_v23, %v1786_v0  ;;  %vm1912_vm8 = vcmp.lt.s32.totalorder %v1909_v60, %v1788_v8  ;;  %v4025_v22 = vadd.s32 504, %v3647_v16  ;;  %v5040_v58 = vrot.slane %v5039_v32, 1  ;;  %v5043_v30 = vld [vmem:[#allocation141_spill] sm:$0xff] }
 0x270   : > { %v1911_v43 = vsel %vm1910_vm12, %v1907_v23, %v1786_v0  ;;  %v1913_v59 = vsel %vm1912_vm8, %v1909_v60, %v1788_v8  ;;  %v1794_v40 = vsel %vm1666_vm2, %v5041_v54, 512  ;;  %v1796_v0 = vsel %vm1668_vm3, %v5043_v30, 512  ;;  %v5045_v60 = vld [vmem:[#allocation142_spill] sm:$0xff]  ;;  %v5051_v30 = vld [vmem:[#allocation65_spill] sm:$0xff] }
 0x271   : > { %5038 = vst [vmem:[#allocation58_spill] sm:$0xff] %v4025_v22  ;;  %vm1914_vm11 = vcmp.lt.s32.totalorder %v1911_v43, %v1790_v36  ;;  %vm1916_vm10 = vcmp.lt.s32.totalorder %v1913_v59, %v1792_v61  ;;  %v4030_v17 = vmin.f32 %v5039_v32, %v5040_v58  ;;  %v1798_v1 = vsel %vm1670_vm4, %v5045_v60, 512  ;;  %v5054_v60 = vld [vmem:[#allocation112_spill] sm:$0xff]  ;;  %v5058_v54 = vld [vmem:[#allocation114_spill] sm:$0xff] }
 0x272   : > { %v1915_v8 = vsel %vm1914_vm11, %v1911_v43, %v1790_v36  ;;  %v1917_v23 = vsel %vm1916_vm10, %v1913_v59, %v1792_v61  ;;  %v1800_v58 = vsel %vm1672_vm5, %v5047_v28, 512  ;;  %v1802_v6 = vsel %vm1674_vm6, %v5049_v49, 512  ;;  %v5053_v43 = vld [vmem:[#allocation144_spill] sm:$0xff]  ;;  %v5056_v28 = vld [vmem:[#allocation113_spill] sm:$0xff] }
 0x273   : > { %vm1918_vm14 = vcmp.lt.s32.totalorder %v1915_v8, %v1794_v40  ;;  %vm1920_vm15 = vcmp.lt.s32.totalorder %v1917_v23, %v1796_v0  ;;  %v1804_v59 = vsel %vm1676_vm7, %v5051_v30, 512  ;;  %vm5055_vm2 = vcmp.eq.f32.partialorder %v5054_v60, %v3650_v25  ;;  %v5062_v60 = vld [vmem:[#allocation11_spill] sm:$0xff] }
 0x274   : > { %v1919_v61 = vsel %vm1918_vm14, %v1915_v8, %v1794_v40  ;;  %v1921_v55 = vsel %vm1920_vm15, %v1917_v23, %v1796_v0  ;;  %v1806_v32 = vsel %vm5055_vm2, %v5053_v43, 512  ;;  %vm5057_vm3 = vcmp.eq.f32.partialorder %v5056_v28, %v3650_v25  ;;  %v5060_v40 = vld [vmem:[#allocation117_spill] sm:$0xff]  ;;  %v5063_v28 = vld [vmem:[#allocation10_spill] sm:$0xff] }
 0x275   : > { %v1808_v18 = vsel %vm5057_vm3, %v4017_v51, 512  ;;  %vm1922_vm4 = vcmp.lt.s32.totalorder %v1919_v61, %v1798_v1  ;;  %vm1924_vm5 = vcmp.lt.s32.totalorder %v1921_v55, %v1800_v58  ;;  %vm5059_vm6 = vcmp.eq.f32.partialorder %v5058_v54, %v3650_v25  ;;  %v5064_v54 = vld [vmem:[#allocation5_spill] sm:$0xff] }
 0x276   : > { %v1810_v36 = vsel %vm5059_vm6, %v4020_v39, 512  ;;  %vm5061_vm7 = vcmp.eq.f32.partialorder %v5060_v40, %v3650_v25  ;;  %v1923_v8 = vsel %vm1922_vm4, %v1919_v61, %v1798_v1  ;;  %v1925_v23 = vsel %vm1924_vm5, %v1921_v55, %v1800_v58  ;;  %v5065_v39 = vld [vmem:[#allocation17_spill] sm:$0xff]  ;;  %v5066_v1 = vld [vmem:[#allocation6_spill] sm:$0xff]  ;;  %v5067_v25 = vld [vmem:[#allocation47_spill] sm:$0xff] }
 0x277   : > { %v1812_v0 = vsel %vm5061_vm7, %v4025_v22, 512  ;;  %vm1926_vm0 = vcmp.lt.s32.totalorder %v1923_v8, %v1802_v6  ;;  %vm1928_vm1 = vcmp.lt.s32.totalorder %v1925_v23, %v1804_v59  ;;  %vm1559_vm9 = vcmp.eq.f32.partialorder %v5062_v60, %v4030_v17  ;;  %v5069_v40 = vld [vmem:[#allocation130_spill] sm:$0xff] }
 0x278   : > { %vm1561_vm13 = vcmp.eq.f32.partialorder %v5063_v28, %v4030_v17  ;;  %v1927_v51 = vsel %vm1926_vm0, %v1923_v8, %v1802_v6  ;;  %v1929_v43 = vsel %vm1928_vm1, %v1925_v23, %v1804_v59  ;;  %vm1563_vm12 = vcmp.eq.f32.partialorder %v5064_v54, %v4030_v17  ;;  %v5068_v6 = vld [vmem:[#allocation129_spill] sm:$0xff]  ;;  %v5070_v23 = vld [vmem:[#allocation131_spill] sm:$0xff]  ;;  %v5072_v22 = vld [vmem:[#allocation22_spill] sm:$0xff] }
 0x279   : > { %vm1565_vm8 = vcmp.eq.f32.partialorder %v5065_v39, %v4030_v17  ;;  %vm1930_vm11 = vcmp.lt.s32.totalorder %v1927_v51, %v1806_v32  ;;  %vm1932_vm10 = vcmp.lt.s32.totalorder %v1929_v43, %v1808_v18  ;;  %vm1567_vm14 = vcmp.eq.f32.partialorder %v5066_v1, %v4030_v17  ;;  %v5071_v54 = vld [vmem:[#allocation13_spill] sm:$0xff] }
 0x27a   : > { %vm1569_vm15 = vcmp.eq.f32.partialorder %v5067_v25, %v4030_v17  ;;  %v1931_v58 = vsel %vm1930_vm11, %v1927_v51, %v1806_v32  ;;  %v1933_v61 = vsel %vm1932_vm10, %v1929_v43, %v1808_v18  ;;  %v1687_v55 = vsel %vm1559_vm9, %v3647_v16, 512  ;;  %v5073_v18 = vld [vmem:[#allocation8_spill] sm:$0xff]  ;;  %v5074_v51 = vld [vmem:[#allocation25_spill] sm:$0xff] }
 0x27b   : > { %v1689_v59 = vsel %vm1561_vm13, %v5068_v6, 512  ;;  %vm1934_vm2 = vcmp.lt.s32.totalorder %v1931_v58, %v1810_v36  ;;  %vm1936_vm3 = vcmp.lt.s32.totalorder %v1933_v61, %v1812_v0  ;;  %v1691_v8 = vsel %vm1563_vm12, %v5069_v40, 512  ;;  %v5075_v43 = vld [vmem:[#allocation12_spill] sm:$0xff] }
 0x27c   : > { %v1693_v39 = vsel %vm1565_vm8, %v5070_v23, 512  ;;  %v1935_v60 = vsel %vm1934_vm2, %v1931_v58, %v1810_v36  ;;  %v1937_v28 = vsel %vm1936_vm3, %v1933_v61, %v1812_v0  ;;  %vm1571_vm4 = vcmp.eq.f32.partialorder %v5071_v54, %v4030_v17  ;;  %v5076_v36 = vld [vmem:[#allocation30_spill] sm:$0xff]  ;;  %v5077_v0 = vld [vmem:[#allocation132_spill] sm:$0xff]  ;;  %v5078_v23 = vld [vmem:[#allocation37_spill] sm:$0xff] }
 0x27d   : > { %vm1573_vm5 = vcmp.eq.f32.partialorder %v5072_v22, %v4030_v17  ;;  %vm1938_vm6 = vcmp.lt.s32.totalorder %v1935_v60, %v1937_v28  ;;  %vm1575_vm7 = vcmp.eq.f32.partialorder %v5073_v18, %v4030_v17  ;;  %vm1577_vm0 = vcmp.eq.f32.partialorder %v5074_v51, %v4030_v17  ;;  %v5083_v54 = vld [vmem:[#allocation33_spill] sm:$0xff] }
 0x27e   : > { %vm1579_vm1 = vcmp.eq.f32.partialorder %v5075_v43, %v4030_v17  ;;  %v4098_v32 = vsel %vm1938_vm6, %v1935_v60, %v1937_v28  ;;  %vm1581_vm9 = vcmp.eq.f32.partialorder %v5076_v36, %v4030_v17  ;;  %vm1949_vm13 = vcmp.lt.s32.totalorder %v1687_v55, %v1691_v8  ;;  %v5079_v60 = vld [vmem:[#allocation36_spill] sm:$0xff]  ;;  %v5082_v28 = vld [vmem:[#allocation43_spill] sm:$0xff] }
 0x27f   : > { %vm1951_vm12 = vcmp.lt.s32.totalorder %v1689_v59, %v1693_v39  ;;  %v1695_v58 = vsel %vm1567_vm14, %v5077_v0, 512  ;;  %v1697_v61 = vsel %vm1569_vm15, %v3666_v19, 512  ;;  %v1950_v6 = vsel %vm1949_vm13, %v1687_v55, %v1691_v8  ;;  %v5081_v8 = vld [vmem:[#allocation55_spill] sm:$0xff]  ;;  %v5084_v0 = vld [vmem:[#allocation46_spill] sm:$0xff] }
 0x280   : > { %v1952_v40 = vsel %vm1951_vm12, %v1689_v59, %v1693_v39  ;;  %vm1583_vm8 = vcmp.eq.f32.partialorder %v5078_v23, %v4030_v17  ;;  %vm1585_vm11 = vcmp.eq.f32.partialorder %v5079_v60, %v4030_v17  ;;  %vm1953_vm10 = vcmp.lt.s32.totalorder %v1950_v6, %v1695_v58  ;;  %v5080_v59 = vld [vmem:[#allocation41_spill] sm:$0xff]  ;;  %v5088_v60 = vld [vmem:[#allocation48_spill] sm:$0xff] }
 0x281   : > { %vm1955_vm2 = vcmp.lt.s32.totalorder %v1952_v40, %v1697_v61  ;;  %v1699_v1 = vsel %vm1571_vm4, %v3669_v15, 512  ;;  %v1701_v19 = vsel %vm1573_vm5, %v3672_v62, 512  ;;  %v1954_v25 = vsel %vm1953_vm10, %v1950_v6, %v1695_v58  ;;  %v5085_v58 = vld [vmem:[#allocation39_spill] sm:$0xff]  ;;  %v5087_v6 = vld [vmem:[#allocation45_spill] sm:$0xff] }
 0x282   : > { %v1956_v55 = vsel %vm1955_vm2, %v1952_v40, %v1697_v61  ;;  %vm1587_vm14 = vcmp.eq.f32.partialorder %v5080_v59, %v4030_v17  ;;  %vm1589_vm15 = vcmp.eq.f32.partialorder %v5081_v8, %v4030_v17  ;;  %vm1957_vm3 = vcmp.lt.s32.totalorder %v1954_v25, %v1699_v1  ;;  %v5086_v61 = vld [vmem:[#allocation24_spill] sm:$0xff] }
 0x283   : > { %vm1959_vm6 = vcmp.lt.s32.totalorder %v1956_v55, %v1701_v19  ;;  %v1703_v15 = vsel %vm1575_vm7, %v3675_v11, 512  ;;  %v1705_v62 = vsel %vm1577_vm0, %v3678_v31, 512  ;;  %v1958_v22 = vsel %vm1957_vm3, %v1954_v25, %v1699_v1  ;;  %v5089_v1 = vld [vmem:[#allocation86_spill] sm:$0xff]  ;;  %v5091_v59 = vld [vmem:[#allocation96_spill] sm:$0xff] }
 0x284   : > { %v1960_v39 = vsel %vm1959_vm6, %v1956_v55, %v1701_v19  ;;  %vm1591_vm4 = vcmp.eq.f32.partialorder %v5082_v28, %v4030_v17  ;;  %vm1593_vm5 = vcmp.eq.f32.partialorder %v5083_v54, %v4030_v17  ;;  %vm1961_vm13 = vcmp.lt.s32.totalorder %v1958_v22, %v1703_v15  ;;  %v5090_v55 = vld [vmem:[#allocation57_spill] sm:$0xff]  ;;  %v5094_v54 = vld [vmem:[#allocation32_spill] sm:$0xff] }
 0x285   : > { %vm1963_vm12 = vcmp.lt.s32.totalorder %v1960_v39, %v1705_v62  ;;  %v1707_v11 = vsel %vm1579_vm1, %v3681_v3, 512  ;;  %v1709_v31 = vsel %vm1581_vm9, %v3704_v34, 512  ;;  %v1962_v18 = vsel %vm1961_vm13, %v1958_v22, %v1703_v15  ;;  %v5093_v22 = vld [vmem:[#allocation94_spill] sm:$0xff] }
 0x286   : > { %v1964_v51 = vsel %vm1963_vm12, %v1960_v39, %v1705_v62  ;;  %vm1595_vm7 = vcmp.eq.f32.partialorder %v5084_v0, %v4030_v17  ;;  %vm1597_vm0 = vcmp.eq.f32.partialorder %v5085_v58, %v4030_v17  ;;  %vm1965_vm10 = vcmp.lt.s32.totalorder %v1962_v18, %v1707_v11  ;;  %v5092_v62 = vld [vmem:[#allocation106_spill] sm:$0xff]  ;;  %v5097_v0 = vld [vmem:[#allocation109_spill] sm:$0xff] }
 0x287   : > { %vm1967_vm2 = vcmp.lt.s32.totalorder %v1964_v51, %v1709_v31  ;;  %v1711_v3 = vsel %vm1583_vm8, %v3707_v12, 512  ;;  %v1713_v34 = vsel %vm1585_vm11, %v3710_v4, 512  ;;  %v1966_v43 = vsel %vm1965_vm10, %v1962_v18, %v1707_v11  ;;  %v5095_v11 = vld [vmem:[#allocation79_spill] sm:$0xff] }
 0x288   : > { %v1968_v36 = vsel %vm1967_vm2, %v1964_v51, %v1709_v31  ;;  %vm1599_vm1 = vcmp.eq.f32.partialorder %v5086_v61, %v4030_v17  ;;  %vm1601_vm9 = vcmp.eq.f32.partialorder %v5087_v6, %v4030_v17  ;;  %vm1969_vm3 = vcmp.lt.s32.totalorder %v1966_v43, %v1711_v3  ;;  %v5096_v51 = vld [vmem:[#allocation38_spill] sm:$0xff]  ;;  %v5100_v6 = vld [vmem:[#allocation31_spill] sm:$0xff] }
 0x289   : > { %vm1971_vm6 = vcmp.lt.s32.totalorder %v1968_v36, %v1713_v34  ;;  %v1715_v12 = vsel %vm1587_vm14, %v3713_v2, 512  ;;  %v1717_v4 = vsel %vm1589_vm15, %v3716_v10, 512  ;;  %v1970_v40 = vsel %vm1969_vm3, %v1966_v43, %v1711_v3  ;;  %v5099_v43 = vld [vmem:[#allocation15_spill] sm:$0xff] }
 0x28a   : > { %v1972_v23 = vsel %vm1971_vm6, %v1968_v36, %v1713_v34  ;;  %vm1603_vm8 = vcmp.eq.f32.partialorder %v5088_v60, %v4030_v17  ;;  %vm1605_vm11 = vcmp.eq.f32.partialorder %v5089_v1, %v4030_v17  ;;  %vm1973_vm13 = vcmp.lt.s32.totalorder %v1970_v40, %v1715_v12  ;;  %v5098_v34 = vld [vmem:[#allocation19_spill] sm:$0xff]  ;;  %v5103_v60 = vld [vmem:[#allocation18_spill] sm:$0xff] }
 0x28b   : > { %vm1975_vm12 = vcmp.lt.s32.totalorder %v1972_v23, %v1717_v4  ;;  %v1719_v2 = vsel %vm1591_vm4, %v3719_v33, 512  ;;  %v1721_v10 = vsel %vm1593_vm5, %v3725_v27, 512  ;;  %v1974_v19 = vsel %vm1973_vm13, %v1970_v40, %v1715_v12  ;;  %v5101_v12 = vld [vmem:[#allocation14_spill] sm:$0xff] }
 0x28c   : > { %v1976_v25 = vsel %vm1975_vm12, %v1972_v23, %v1717_v4  ;;  %vm1607_vm14 = vcmp.eq.f32.partialorder %v5090_v55, %v4030_v17  ;;  %vm1609_vm15 = vcmp.eq.f32.partialorder %v5091_v59, %v4030_v17  ;;  %vm1977_vm10 = vcmp.lt.s32.totalorder %v1974_v19, %v1719_v2  ;;  %v5102_v23 = vld [vmem:[#allocation16_spill] sm:$0xff] }
 0x28d   : > { %vm1979_vm2 = vcmp.lt.s32.totalorder %v1976_v25, %v1721_v10  ;;  %v1723_v33 = vsel %vm1595_vm7, %v3731_v21, 512  ;;  %v1725_v27 = vsel %vm1597_vm0, %v3737_v29, 512  ;;  %v1978_v8 = vsel %vm1977_vm10, %v1974_v19, %v1719_v2  ;;  %v5105_v19 = vld [vmem:[#allocation42_spill] sm:$0xff]  ;;  %v5106_v59 = vld [vmem:[#allocation60_spill] sm:$0xff] }
 0x28e   : > { %v1980_v15 = vsel %vm1979_vm2, %v1976_v25, %v1721_v10  ;;  %vm1611_vm4 = vcmp.eq.f32.partialorder %v5092_v62, %v4030_v17  ;;  %vm1613_vm5 = vcmp.eq.f32.partialorder %v5093_v22, %v4030_v17  ;;  %vm1981_vm3 = vcmp.lt.s32.totalorder %v1978_v8, %v1723_v33  ;;  %v5104_v10 = vld [vmem:[#allocation20_spill] sm:$0xff] }
 0x28f   : > { %vm1983_vm6 = vcmp.lt.s32.totalorder %v1980_v15, %v1725_v27  ;;  %v1727_v21 = vsel %vm1599_vm1, %v3743_v5, 512  ;;  %v1729_v29 = vsel %vm1601_vm9, %v3749_v44, 512  ;;  %v1982_v39 = vsel %vm1981_vm3, %v1978_v8, %v1723_v33  ;;  %v5107_v33 = vld [vmem:[#allocation104_spill] sm:$0xff] }
 0x290   : > { %v1984_v28 = vsel %vm1983_vm6, %v1980_v15, %v1725_v27  ;;  %vm1615_vm7 = vcmp.eq.f32.partialorder %v5094_v54, %v4030_v17  ;;  %vm1617_vm0 = vcmp.eq.f32.partialorder %v5095_v11, %v4030_v17  ;;  %vm1985_vm13 = vcmp.lt.s32.totalorder %v1982_v39, %v1727_v21  ;;  %v5108_v15 = vld [vmem:[#allocation107_spill] sm:$0xff]  ;;  %v5109_v62 = vld [vmem:[#allocation108_spill] sm:$0xff] }
 0x291   : > { %vm1987_vm12 = vcmp.lt.s32.totalorder %v1984_v28, %v1729_v29  ;;  %v1731_v5 = vsel %vm1603_vm8, %v3755_v42, 512  ;;  %v1733_v44 = vsel %vm1605_vm11, %v3761_v9, 512  ;;  %v1986_v31 = vsel %vm1985_vm13, %v1982_v39, %v1727_v21  ;;  %v5111_v39 = vld [vmem:[#allocation26_spill] sm:$0xff]  ;;  %v5112_v11 = vld [vmem:[#allocation99_spill] sm:$0xff] }
 0x292   : > { %v1988_v18 = vsel %vm1987_vm12, %v1984_v28, %v1729_v29  ;;  %vm1619_vm1 = vcmp.eq.f32.partialorder %v5096_v51, %v4030_v17  ;;  %vm1621_vm9 = vcmp.eq.f32.partialorder %v5097_v0, %v4030_v17  ;;  %vm1989_vm10 = vcmp.lt.s32.totalorder %v1986_v31, %v1731_v5  ;;  %v5110_v29 = vld [vmem:[#allocation89_spill] sm:$0xff]  ;;  %v5115_v51 = vld [vmem:[#allocation7_spill] sm:$0xff] }
 0x293   : > { %vm1991_vm2 = vcmp.lt.s32.totalorder %v1988_v18, %v1733_v44  ;;  %v1735_v42 = vsel %vm1607_vm14, %v3767_v63, 512  ;;  %v1737_v9 = vsel %vm1609_vm15, %v3773_v45, 512  ;;  %v1990_v58 = vsel %vm1989_vm10, %v1986_v31, %v1731_v5  ;;  %v5113_v5 = vld [vmem:[#allocation100_spill] sm:$0xff] }
 0x294   : > { %v1992_v3 = vsel %vm1991_vm2, %v1988_v18, %v1733_v44  ;;  %vm1623_vm8 = vcmp.eq.f32.partialorder %v5098_v34, %v4030_v17  ;;  %vm1625_vm11 = vcmp.eq.f32.partialorder %v5099_v43, %v4030_v17  ;;  %vm1993_vm3 = vcmp.lt.s32.totalorder %v1990_v58, %v1735_v42  ;;  %v5114_v18 = vld [vmem:[#allocation102_spill] sm:$0xff] }
 0x295   : > { %vm1995_vm6 = vcmp.lt.s32.totalorder %v1992_v3, %v1737_v9  ;;  %v1739_v63 = vsel %vm1611_vm4, %v3779_v41, 512  ;;  %v1741_v45 = vsel %vm1613_vm5, %v3785_v13, 512  ;;  %v1994_v36 = vsel %vm1993_vm3, %v1990_v58, %v1735_v42  ;;  %v5117_v58 = vld [vmem:[#allocation115_spill] sm:$0xff]  ;;  %v5119_v34 = vld [vmem:[#allocation134_spill] sm:$0xff] }
 0x296   : > { %v1996_v61 = vsel %vm1995_vm6, %v1992_v3, %v1737_v9  ;;  %vm1627_vm14 = vcmp.eq.f32.partialorder %v5100_v6, %v4030_v17  ;;  %vm1629_vm15 = vcmp.eq.f32.partialorder %v5101_v12, %v4030_v17  ;;  %vm1997_vm13 = vcmp.lt.s32.totalorder %v1994_v36, %v1739_v63  ;;  %v5116_v9 = vld [vmem:[#allocation34_spill] sm:$0xff]  ;;  %v5118_v3 = vld [vmem:[#allocation133_spill] sm:$0xff]  ;;  %v5123_v12 = vld [vmem:[#allocation136_spill] sm:$0xff] }
 0x297   : > { %vm1999_vm12 = vcmp.lt.s32.totalorder %v1996_v61, %v1741_v45  ;;  %v1743_v41 = vsel %vm1615_vm7, %v3791_v52, 512  ;;  %v1745_v13 = vsel %vm1617_vm0, %v3797_v53, 512  ;;  %v1998_v4 = vsel %vm1997_vm13, %v1994_v36, %v1739_v63  ;;  %v5121_v36 = vld [vmem:[#allocation118_spill] sm:$0xff] }
 0x298   : > { %v2000_v40 = vsel %vm1999_vm12, %v1996_v61, %v1741_v45  ;;  %vm1631_vm4 = vcmp.eq.f32.partialorder %v5102_v23, %v4030_v17  ;;  %vm1633_vm5 = vcmp.eq.f32.partialorder %v5103_v60, %v4030_v17  ;;  %vm2001_vm10 = vcmp.lt.s32.totalorder %v1998_v4, %v1743_v41  ;;  %v5120_v45 = vld [vmem:[#allocation116_spill] sm:$0xff]  ;;  %v5122_v61 = vld [vmem:[#allocation135_spill] sm:$0xff]  ;;  %v5126_v60 = vld [vmem:[#allocation137_spill] sm:$0xff] }
 0x299   : > { %vm2003_vm2 = vcmp.lt.s32.totalorder %v2000_v40, %v1745_v13  ;;  %v1747_v52 = vsel %vm1619_vm1, %v3803_v20, 512  ;;  %v1749_v53 = vsel %vm1621_vm9, %v3809_v47, 512  ;;  %v2002_v1 = vsel %vm2001_vm10, %v1998_v4, %v1743_v41  ;;  %v5125_v23 = vld [vmem:[#allocation120_spill] sm:$0xff] }
 0x29a   : > { %v2004_v2 = vsel %vm2003_vm2, %v2000_v40, %v1745_v13  ;;  %vm1635_vm7 = vcmp.eq.f32.partialorder %v5104_v10, %v4030_v17  ;;  %vm1637_vm0 = vcmp.eq.f32.partialorder %v5105_v19, %v4030_v17  ;;  %vm2005_vm3 = vcmp.lt.s32.totalorder %v2002_v1, %v1747_v52  ;;  %v5124_v40 = vld [vmem:[#allocation119_spill] sm:$0xff] }
 0x29b   : > { %vm2007_vm6 = vcmp.lt.s32.totalorder %v2004_v2, %v1749_v53  ;;  %v1751_v20 = vsel %vm1623_vm8, %v3722_v7, 512  ;;  %v1753_v47 = vsel %vm1625_vm11, %v3728_v14, 512  ;;  %v2006_v25 = vsel %vm2005_vm3, %v2002_v1, %v1747_v52 }
 0x29c   : > { %v2008_v55 = vsel %vm2007_vm6, %v2004_v2, %v1749_v53  ;;  %vm1639_vm1 = vcmp.eq.f32.partialorder %v5106_v59, %v4030_v17  ;;  %vm1641_vm9 = vcmp.eq.f32.partialorder %v5107_v33, %v4030_v17  ;;  %vm2009_vm13 = vcmp.lt.s32.totalorder %v2006_v25, %v1751_v20  ;;  %v5127_v53 = vld [vmem:[#allocation53_spill] sm:$0xff] }
 0x29d   : > { %vm2011_vm12 = vcmp.lt.s32.totalorder %v2008_v55, %v1753_v47  ;;  %v1755_v7 = vsel %vm1627_vm14, %v3734_v37, 512  ;;  %v1757_v14 = vsel %vm1629_vm15, %v3740_v50, 512  ;;  %v2010_v27 = vsel %vm2009_vm13, %v2006_v25, %v1751_v20  ;;  %v5128_v20 = vld [vmem:[#allocation121_spill] sm:$0xff] }
 0x29e   : > { %v2012_v8 = vsel %vm2011_vm12, %v2008_v55, %v1753_v47  ;;  %vm1643_vm8 = vcmp.eq.f32.partialorder %v5108_v15, %v4030_v17  ;;  %vm1645_vm11 = vcmp.eq.f32.partialorder %v5109_v62, %v4030_v17  ;;  %vm2013_vm10 = vcmp.lt.s32.totalorder %v2010_v27, %v1755_v7  ;;  %v5129_v47 = vld [vmem:[#allocation9_spill] sm:$0xff]  ;;  %v5130_v55 = vld [vmem:[#allocation50_spill] sm:$0xff]  ;;  %v5134_v62 = vld [vmem:[#allocation139_spill] sm:$0xff] }
 0x29f   : > { %vm2015_vm2 = vcmp.lt.s32.totalorder %v2012_v8, %v1757_v14  ;;  %v1759_v37 = vsel %vm1631_vm4, %v3746_v24, 512  ;;  %v1761_v50 = vsel %vm1633_vm5, %v3752_v26, 512  ;;  %v2014_v22 = vsel %vm2013_vm10, %v2010_v27, %v1755_v7  ;;  %v5132_v27 = vld [vmem:[#allocation123_spill] sm:$0xff] }
 0x2a0   : > { %v2016_v21 = vsel %vm2015_vm2, %v2012_v8, %v1757_v14  ;;  %vm1647_vm14 = vcmp.eq.f32.partialorder %v5110_v29, %v4030_v17  ;;  %vm1649_vm15 = vcmp.eq.f32.partialorder %v5111_v39, %v4030_v17  ;;  %vm2017_vm3 = vcmp.lt.s32.totalorder %v2014_v22, %v1759_v37  ;;  %v5131_v14 = vld [vmem:[#allocation122_spill] sm:$0xff]  ;;  %v5136_v29 = vld [vmem:[#allocation140_spill] sm:$0xff] }
 0x2a1   : > { %vm2019_vm6 = vcmp.lt.s32.totalorder %v2016_v21, %v1761_v50  ;;  %v1763_v24 = vsel %vm1635_vm7, %v3758_v46, 512  ;;  %v1765_v26 = vsel %vm1637_vm0, %v3764_v57, 512  ;;  %v2018_v28 = vsel %vm2017_vm3, %v2014_v22, %v1759_v37  ;;  %v5133_v8 = vld [vmem:[#allocation138_spill] sm:$0xff] }
 0x2a2   : > { %v2020_v54 = vsel %vm2019_vm6, %v2016_v21, %v1761_v50  ;;  %vm1651_vm4 = vcmp.eq.f32.partialorder %v5112_v11, %v4030_v17  ;;  %vm1653_vm5 = vcmp.eq.f32.partialorder %v5113_v5, %v4030_v17  ;;  %vm2021_vm13 = vcmp.lt.s32.totalorder %v2018_v28, %v1763_v24  ;;  %v5135_v21 = vld [vmem:[#allocation124_spill] sm:$0xff]  ;;  %v5138_v11 = vld [vmem:[#allocation125_spill] sm:$0xff]  ;;  %v5139_v5 = vld [vmem:[#allocation142_spill] sm:$0xff] }
 0x2a3   : > { %vm2023_vm12 = vcmp.lt.s32.totalorder %v2020_v54, %v1765_v26  ;;  %v1767_v46 = vsel %vm1639_vm1, %v3770_v38, 512  ;;  %v1769_v57 = vsel %vm1641_vm9, %v3776_v56, 512  ;;  %v2022_v44 = vsel %vm2021_vm13, %v2018_v28, %v1763_v24  ;;  %v5137_v24 = vld [vmem:[#allocation141_spill] sm:$0xff] }
 0x2a4   : > { %v2024_v31 = vsel %vm2023_vm12, %v2020_v54, %v1765_v26  ;;  %vm1655_vm7 = vcmp.eq.f32.partialorder %v5114_v18, %v4030_v17  ;;  %vm1657_vm0 = vcmp.eq.f32.partialorder %v5115_v51, %v4030_v17  ;;  %vm2025_vm10 = vcmp.lt.s32.totalorder %v2022_v44, %v1767_v46 }
 0x2a5   : > { %vm2027_vm2 = vcmp.lt.s32.totalorder %v2024_v31, %v1769_v57  ;;  %v1771_v38 = vsel %vm1643_vm8, %v3782_v35, 512  ;;  %v1773_v56 = vsel %vm1645_vm11, %v3788_v48, 512  ;;  %v2026_v0 = vsel %vm2025_vm10, %v2022_v44, %v1767_v46  ;;  %v5140_v44 = vld [vmem:[#allocation143_spill] sm:$0xff] }
 0x2a6   : > { %v2028_v42 = vsel %vm2027_vm2, %v2024_v31, %v1769_v57  ;;  %vm1659_vm1 = vcmp.eq.f32.partialorder %v5116_v9, %v4030_v17  ;;  %vm1661_vm9 = vcmp.eq.f32.partialorder %v5117_v58, %v4030_v17  ;;  %vm2029_vm3 = vcmp.lt.s32.totalorder %v2026_v0, %v1771_v38 }
 0x2a7   : > { %vm2031_vm6 = vcmp.lt.s32.totalorder %v2028_v42, %v1773_v56  ;;  %v1775_v35 = vsel %vm1647_vm14, %v5118_v3, 512  ;;  %v1777_v48 = vsel %vm1649_vm15, %v5119_v34, 512  ;;  %v2030_v43 = vsel %vm2029_vm3, %v2026_v0, %v1771_v38  ;;  %v5141_v38 = vld [vmem:[#allocation126_spill] sm:$0xff]  ;;  %v5143_v3 = vld [vmem:[#allocation128_spill] sm:$0xff] }
 0x2a8   : > { %v2032_v63 = vsel %vm2031_vm6, %v2028_v42, %v1773_v56  ;;  %vm1663_vm8 = vcmp.eq.f32.partialorder %v5120_v45, %v4030_v17  ;;  %vm1665_vm11 = vcmp.eq.f32.partialorder %v5121_v36, %v4030_v17  ;;  %vm2033_vm13 = vcmp.lt.s32.totalorder %v2030_v43, %v1775_v35  ;;  %v5142_v56 = vld [vmem:[#allocation127_spill] sm:$0xff]  ;;  %v5147_v36 = vld [vmem:[#allocation58_spill] sm:$0xff] }
 0x2a9   : > { %vm2035_vm12 = vcmp.lt.s32.totalorder %v2032_v63, %v1777_v48  ;;  %v1779_v6 = vsel %vm1651_vm4, %v5122_v61, 512  ;;  %v1781_v41 = vsel %vm1653_vm5, %v5123_v12, 512  ;;  %v2034_v13 = vsel %vm2033_vm13, %v2030_v43, %v1775_v35  ;;  %v5144_v35 = vld [vmem:[#allocation144_spill] sm:$0xff] }
 0x2aa   : > { %v2036_v4 = vsel %vm2035_vm12, %v2032_v63, %v1777_v48  ;;  %vm1667_vm14 = vcmp.eq.f32.partialorder %v5124_v40, %v4030_v17  ;;  %vm1669_vm15 = vcmp.eq.f32.partialorder %v5125_v23, %v4030_v17  ;;  %vm2037_vm10 = vcmp.lt.s32.totalorder %v2034_v13, %v1779_v6  ;;  %v5145_v48 = vld [vmem:[#allocation56_spill] sm:$0xff] }
 0x2ab   : > { %vm2039_vm2 = vcmp.lt.s32.totalorder %v2036_v4, %v1781_v41  ;;  %v1783_v52 = vsel %vm1655_vm7, %v5126_v60, 512  ;;  %v1785_v1 = vsel %vm1657_vm0, %v5127_v53, 512  ;;  %v2038_v2 = vsel %vm2037_vm10, %v2034_v13, %v1779_v6 }
 0x2ac   : > { %v2040_v10 = vsel %vm2039_vm2, %v2036_v4, %v1781_v41  ;;  %v1940_v19 = vrot.slane %v4098_v32, 4  ;;  %vm1671_vm4 = vcmp.eq.f32.partialorder %v5128_v20, %v4030_v17  ;;  %vm2041_vm5 = vcmp.lt.s32.totalorder %v2038_v2, %v1783_v52 }
 0x2ad   : > { %vm2043_vm3 = vcmp.lt.s32.totalorder %v2040_v10, %v1785_v1  ;;  %v1787_v25 = vsel %vm1659_vm1, %v5129_v47, 512  ;;  %v1789_v59 = vsel %vm1661_vm9, %v5130_v55, 512  ;;  %v2042_v33 = vsel %vm2041_vm5, %v2038_v2, %v1783_v52 }
 0x2ae   : > { %v2044_v7 = vsel %vm2043_vm3, %v2040_v10, %v1785_v1  ;;  %vm1673_vm7 = vcmp.eq.f32.partialorder %v5131_v14, %v4030_v17  ;;  %vm1675_vm0 = vcmp.eq.f32.partialorder %v5132_v27, %v4030_v17  ;;  %vm2045_vm6 = vcmp.lt.s32.totalorder %v2042_v33, %v1787_v25 }
 0x2af   : > { %vm2047_vm13 = vcmp.lt.s32.totalorder %v2044_v7, %v1789_v59  ;;  %v1791_v15 = vsel %vm1663_vm8, %v5133_v8, 512  ;;  %v1793_v37 = vsel %vm1665_vm11, %v5134_v62, 512  ;;  %v2046_v50 = vsel %vm2045_vm6, %v2042_v33, %v1787_v25 }
 0x2b0   : > { %v2048_v22 = vsel %vm2047_vm13, %v2044_v7, %v1789_v59  ;;  %vm1941_vm1 = vcmp.lt.s32.totalorder %v4098_v32, %v1940_v19  ;;  %vm1677_vm9 = vcmp.eq.f32.partialorder %v5135_v21, %v4030_v17  ;;  %vm2049_vm12 = vcmp.lt.s32.totalorder %v2046_v50, %v1791_v15 }
 0x2b1   : > { %vm2051_vm10 = vcmp.lt.s32.totalorder %v2048_v22, %v1793_v37  ;;  %v1795_v39 = vsel %vm1667_vm14, %v5136_v29, 512  ;;  %v1797_v26 = vsel %vm1669_vm15, %v5137_v24, 512  ;;  %v2050_v28 = vsel %vm2049_vm12, %v2046_v50, %v1791_v15 }
 0x2b2   : > { %v2052_v54 = vsel %vm2051_vm10, %v2048_v22, %v1793_v37  ;;  %vm1679_vm8 = vcmp.eq.f32.partialorder %v5138_v11, %v4030_v17  ;;  %v1799_v46 = vsel %vm1671_vm4, %v5139_v5, 512  ;;  %vm2053_vm11 = vcmp.lt.s32.totalorder %v2050_v28, %v1795_v39 }
 0x2b3   : > { %vm2055_vm2 = vcmp.lt.s32.totalorder %v2052_v54, %v1797_v26  ;;  %v1942_v57 = vsel %vm1941_vm1, %v4098_v32, %v1940_v19  ;;  %v1801_v31 = vsel %vm1673_vm7, %v5140_v44, 512  ;;  %v2054_v18 = vsel %vm2053_vm11, %v2050_v28, %v1795_v39 }
 0x2b4   : > { %v2056_v51 = vsel %vm2055_vm2, %v2052_v54, %v1797_v26  ;;  %vm1681_vm14 = vcmp.eq.f32.partialorder %v5141_v38, %v4030_v17  ;;  %vm1683_vm15 = vcmp.eq.f32.partialorder %v5142_v56, %v4030_v17  ;;  %vm2057_vm5 = vcmp.lt.s32.totalorder %v2054_v18, %v1799_v46 }
 0x2b5   : > { %vm2059_vm3 = vcmp.lt.s32.totalorder %v2056_v51, %v1801_v31  ;;  %v1803_v32 = vsel %vm1675_vm0, %v5049_v49, 512  ;;  %v1805_v0 = vsel %vm1677_vm9, %v5051_v30, 512  ;;  %v2058_v42 = vsel %vm2057_vm5, %v2054_v18, %v1799_v46  ;;  %v5146_v30 = vld [vmem:[#allocation69_spill] sm:$0xff] }
 0x2b6   : > { %v2060_v9 = vsel %vm2059_vm3, %v2056_v51, %v1801_v31  ;;  %v1943_v58 = vrot.slane %v1942_v57, 2  ;;  %vm1685_vm4 = vcmp.eq.f32.partialorder %v5143_v3, %v4030_v17  ;;  %vm2061_vm7 = vcmp.lt.s32.totalorder %v2058_v42, %v1803_v32 }
 0x2b7   : > { %vm2063_vm6 = vcmp.lt.s32.totalorder %v2060_v9, %v1805_v0  ;;  %v1807_v34 = vsel %vm1679_vm8, %v5144_v35, 512  ;;  %v1809_v49 = vsel %vm1681_vm14, %v5145_v48, 512  ;;  %v2062_v43 = vsel %vm2061_vm7, %v2058_v42, %v1803_v32 }
 0x2b8   : > { %v2064_v63 = vsel %vm2063_vm6, %v2060_v9, %v1805_v0  ;;  %vm2065_vm0 = vcmp.lt.s32.totalorder %v2062_v43, %v1807_v34  ;;  %v1811_v45 = vsel %vm1683_vm15, %v5146_v30, 512  ;;  %v1813_v61 = vsel %vm1685_vm4, %v5147_v36, 512 }
 0x2b9   : > { %vm2067_vm13 = vcmp.lt.s32.totalorder %v2064_v63, %v1809_v49  ;;  %v2066_v6 = vsel %vm2065_vm0, %v2062_v43, %v1807_v34  ;;  %vm1944_vm1 = vcmp.lt.s32.totalorder %v1942_v57, %v1943_v58  ;;  %v2359_v52 = vmov 1966171168  }
 0x2ba   : > { %v2068_v12 = vsel %vm2067_vm13, %v2064_v63, %v1809_v49  ;;  %vm2069_vm9 = vcmp.lt.s32.totalorder %v2066_v6, %v1811_v45  ;;  %v1945_v4 = vsel %vm1944_vm1, %v1942_v57, %v1943_v58  ;;  %v2087_v17 = vunpack.c.l.s4 %v2359_v52 }
 0x2bb   : > { %vm2071_vm12 = vcmp.lt.s32.totalorder %v2068_v12, %v1813_v61  ;;  %v2070_v41 = vsel %vm2069_vm9, %v2066_v6, %v1811_v45  ;;  %v1946_v60 = vrot.slane %v1945_v4, 1  ;;  %v5148_v33 = vlaneseq }
 0x2bc   : > { %v2072_v13 = vsel %vm2071_vm12, %v2068_v12, %v1813_v61  ;;  %v2088_v2 = vunpack.c.0.s8 %v2087_v17 }
 0x2bd   : > { %vm2073_vm10 = vcmp.lt.s32.totalorder %v2070_v41, %v2072_v13  ;;  %vm1947_vm2 = vcmp.lt.s32.totalorder %v1945_v4, %v1946_v60  ;;  %vm2102_vm15 = vcmp.lt.s32.totalorder %v5148_v33, 256 }
 0x2be   : > { %v2074_v40 = vsel %vm2073_vm10, %v2070_v41, %v2072_v13  ;;  %v1948_v20 = vsel %vm1947_vm2, %v1945_v4, %v1946_v60  ;;  %v2091_v47 = vsub.s32 %v2088_v2, %v3647_v16 }
 0x2bf   : > { %v2075_v23 = vrot.slane %v2074_v40, 4 }
 0x2c1   : > { %vm2076_vm8 = vcmp.lt.s32.totalorder %v2074_v40, %v2075_v23 }
 0x2c2   : > { %v2077_v53 = vsel %vm2076_vm8, %v2074_v40, %v2075_v23 }
 0x2c3   : > { %v2078_v1 = vrot.slane %v2077_v53, 2 }
 0x2c5   : > { %vm2079_vm11 = vcmp.lt.s32.totalorder %v2077_v53, %v2078_v1 }
 0x2c6   : > { %v2080_v10 = vsel %vm2079_vm11, %v2077_v53, %v2078_v1 }
 0x2c7   : > { %v2081_v19 = vrot.slane %v2080_v10, 1 }
 0x2c9   : > { %vm2082_vm14 = vcmp.lt.s32.totalorder %v2080_v10, %v2081_v19 }
 0x2ca   : > { %v2083_v25 = vsel %vm2082_vm14, %v2080_v10, %v2081_v19 }
 0x2cb   : > { %v2085_v55 = vcombine.low %v1948_v20, %v2083_v25 }
 0x2cd   : > { %v2092_v59 = vrot.slane %v2085_v55, %v2091_v47 }
 0x2cf   : > { %v2099_v7 = vrot.slane %v2092_v59, %v2091_v47 }
 0x2d1   : > { %2115 = vst.msk [vmem:[%s2114_s12] ss:$2 sm:$0x3] %vm2102_vm15, %v2099_v7 }
 0x2d2   : > { %2316 = shalt.err (!%p2313_p12)
}
 0x2d3   : > { %s2317_s4 = scalar_lea.hbm %s4487_s3, 64 }
 0x2d4   : > { %p2318_p13 = scmp.ne.s32.totalorder %s4487_s3, %s2317_s4  ;;  %p2323_p2 = scmp.lt.u32.totalorder %s2317_s4, %s4487_s3 }
 0x2d6   : > { %p2319_p0 = pnand %p2318_p13, %p4449_p5 }
 0x2d8   : > { %p2320_p1 = pneg %p2319_p0 }
 0x2da   : > { %p2325_p3 = pnand %p2323_p2, %p2320_p1 }
 0x2dc   : > { %2328 = shalt.err (!%p2325_p3)
}
 0x2dd   : > { %2265 = dma.vmem_to_hbm [thread:$0]  (%p4449_p5), %s2124_s27, 64, %s4487_s3, [#allocation3]  }
 0x2de   : > { %2342 = dma.done.wait (%p4449_p5), [#allocation3], 64  }
 0x2df   : > { %2344 = vsyncadd (%p4449_p5), [#allocation3], 4294967232 }
 0x2e0 PF: > { %s14_s14 = sadd.s32 1, %s2355_s14   ;;  %s5150_s12 = smov %s2351_s13 }
 0x2e1   : > { %p11_p4 = scmp.ge.s32.totalorder %s14_s14, 4   ;;  %s5151_s13 = smov %s5153_s16 }
 0x2e3   :  { %13 = sbr.rel (!%p11_p4) target bundleno = 2 (0x2), region = 60 }
 0x2ea   :  { %2136 = vsyncpa [#allocation3], 1 }
 0x2eb   :  { %2138 = vsyncpa [#allocation3 + $0x1], 1 }

</bundles_post_ra>
